<compile_context>
chip_gen: v7x
topology: tpu7x:2x2x1
jax: 0.10.0
libtpu: 0.0.40
codegen_flags: <defaults>
</compile_context>

<pallas_src>
import functools

import jax
import jax.numpy as jnp
from jax.experimental import pallas as pl
from jax.experimental.pallas import tpu as pltpu


def _round_up(a, m):
    return (a + m - 1) // m * m


def _kae_fused_kernel(x_ref, enc_w_ref, enc_b_ref, dec_w_ref, dec_b_ref, o_ref,
                      *, enc_powers, dec_powers, latent_dim):
    """Fused KAE forward for one batch tile.

    x_ref:     [TB, D_in]                 (VMEM)
    enc_w_ref: [enc_powers, D_in, L]      powers 1..order (k=0 folded into bias)
    enc_b_ref: [1, L]                     bias + colsum(W_enc[k=0])
    dec_w_ref: [dec_powers * L, D_out]    powers 1..order concatenated along rows
    dec_b_ref: [1, D_out]                 bias + colsum(W_dec[k=0])
    o_ref:     [TB, D_out]
    """
    x = x_ref[...].astype(jnp.float32)                      # [TB, D_in]

    # ---- encoder: sum_{k=1..order} (x**k) @ W_enc[k]  (k=0 folded into bias) ----
    acc = jnp.dot(x, enc_w_ref[0], preferred_element_type=jnp.float32)
    xp = x
    for k in range(1, enc_powers):                          # static unroll (small K)
        xp = xp * x
        acc = acc + jnp.dot(xp, enc_w_ref[k],
                            preferred_element_type=jnp.float32)
    z = jnp.maximum(acc + enc_b_ref[...], 0.0)              # ReLU, [TB, L]

    # ---- decoder: one matmul over concatenated polynomial features ----
    feats = [z]
    zp = z
    for _ in range(1, dec_powers):
        zp = zp * z
        feats.append(zp)
    zcat = jnp.concatenate(feats, axis=-1)                  # [TB, dec_powers*L]
    y = jnp.dot(zcat, dec_w_ref[...], preferred_element_type=jnp.float32)
    y = y + dec_b_ref[...]                                  # broadcast [1, D_out]
    o_ref[...] = jax.nn.sigmoid(y).astype(o_ref.dtype)


def pack_kae_params(enc_coeffs, enc_bias, dec_coeffs, dec_bias):
    """Re-layout PyTorch-shaped params for the fused kernel.

    coeffs: [out, in, order+1] (as in the nn.Module); bias: [1, out].
      * k=0 (x**0 == 1) is folded into the bias: b_eff = b + sum_i coeffs[:, i, 0]
      * encoder keeps powers 1..order as [order, in, latent]
      * decoder concatenates powers 1..order into one [(order)*latent, out] matrix
    """
    enc_w_full = jnp.transpose(enc_coeffs, (2, 1, 0))       # [K, in, latent]
    dec_w_full = jnp.transpose(dec_coeffs, (2, 1, 0))       # [K, latent, out]

    enc_b = enc_bias + jnp.sum(enc_w_full[0], axis=0, keepdims=True)   # [1, latent]
    dec_b = dec_bias + jnp.sum(dec_w_full[0], axis=0, keepdims=True)   # [1, out]

    enc_w = enc_w_full[1:]                                  # [K-1, in, latent]
    km1, latent, d_out = dec_w_full.shape[0] - 1, dec_w_full.shape[1], dec_w_full.shape[2]
    dec_w = dec_w_full[1:].reshape(km1 * latent, d_out)     # [(K-1)*latent, out]

    return {"enc_w": enc_w, "enc_b": enc_b, "dec_w": dec_w, "dec_b": dec_b}


def init_kae_params(key, input_dim, latent_dim, output_dim, order=3):
    """PyTorch-style parameter init: coeffs ~ 0.01*randn(out, in, order+1), bias zeros."""
    k1, k2 = jax.random.split(key, 2)
    K = order + 1
    enc_coeffs = 0.01 * jax.random.normal(k1, (latent_dim, input_dim, K), jnp.float32)
    dec_coeffs = 0.01 * jax.random.normal(k2, (output_dim, latent_dim, K), jnp.float32)
    enc_bias = jnp.zeros((1, latent_dim), jnp.float32)
    dec_bias = jnp.zeros((1, output_dim), jnp.float32)
    return {"enc_coeffs": enc_coeffs, "enc_bias": enc_bias,
            "dec_coeffs": dec_coeffs, "dec_bias": dec_bias}


def kae_impl_forward(packed, x):
    """Full KAEImpl.forward: preprocess (flatten) -> fused encoder+decoder kernel."""
    if x.ndim > 2:
        x = x.reshape(x.shape[0], -1)
    x = x.astype(jnp.float32)

    B, d_in = x.shape
    enc_w, enc_b = packed["enc_w"], packed["enc_b"]
    dec_w, dec_b = packed["dec_w"], packed["dec_b"]
    enc_powers, d_in2, latent = enc_w.shape
    assert d_in == d_in2
    d_out = dec_w.shape[1]
    dec_powers = dec_w.shape[0] // latent

    # Pad batch to a sublane multiple and tile it; batch axis is "parallel"
    # so larger batches shard across v7x's two TensorCores.
    tb = min(128, _round_up(B, 8))
    b_pad = _round_up(B, tb)
    if b_pad != B:
        x = jnp.pad(x, ((0, b_pad - B), (0, 0)))
    grid = (b_pad // tb,)

    kernel = functools.partial(_kae_fused_kernel,
                               enc_powers=enc_powers,
                               dec_powers=dec_powers,
                               latent_dim=latent)

    out = pl.pallas_call(
        kernel,
        out_shape=jax.ShapeDtypeStruct((b_pad, d_out), jnp.float32),
        grid_spec=pltpu.PrefetchScalarGridSpec(
            num_scalar_prefetch=0,
            grid=grid,
            in_specs=[
                pl.BlockSpec((tb, d_in), lambda b: (b, 0)),
                pl.BlockSpec((enc_powers, d_in, latent), lambda b: (0, 0, 0)),
                pl.BlockSpec((1, latent), lambda b: (0, 0)),
                pl.BlockSpec((dec_powers * latent, d_out), lambda b: (0, 0)),
                pl.BlockSpec((1, d_out), lambda b: (0, 0)),
            ],
            out_specs=pl.BlockSpec((tb, d_out), lambda b: (b, 0)),
        ),
        compiler_params=pltpu.CompilerParams(
            dimension_semantics=("parallel",),
        ),
    )(x, enc_w, enc_b, dec_w, dec_b)

    return out[:B]


def _reference_forward(raw, x):
    """Pure-JAX reference mirroring the PyTorch loop (x**0 == 1, k = 0..order)."""
    if x.ndim > 2:
        x = x.reshape(x.shape[0], -1)
    x = x.astype(jnp.float32)

    def layer(x, coeffs, bias):
        out_dim, in_dim, K = coeffs.shape
        y = jnp.zeros((x.shape[0], out_dim), jnp.float32)
        for k in range(K):
            y = y + (x ** k) @ coeffs[:, :, k].T
        return y + bias

    z = jax.nn.relu(layer(x, raw["enc_coeffs"], raw["enc_bias"]))
    return jax.nn.sigmoid(layer(z, raw["dec_coeffs"], raw["dec_bias"]))


if __name__ == "__main__":
    key = jax.random.PRNGKey(0)
    kx, kp = jax.random.split(key)

    # Small deterministic input: NCHW image batch [2, 4, 16, 16] -> flattened 1024
    x = jax.random.normal(kx, (2, 4, 16, 16), dtype=jnp.float32)

    input_dim = 4 * 16 * 16    # 1024
    latent_dim = 32
    output_dim = input_dim     # autoencoder reconstructs the flattened input

    raw = init_kae_params(kp, input_dim, latent_dim, output_dim, order=3)
    packed = pack_kae_params(raw["enc_coeffs"], raw["enc_bias"],
                             raw["dec_coeffs"], raw["dec_bias"])

    out = kae_impl_forward(packed, x)
    out = jax.block_until_ready(out)

    ref = _reference_forward(raw, x)
    assert out.shape == (2, output_dim), out.shape
    assert jnp.allclose(out, ref, atol=1e-5, rtol=1e-5), "mismatch vs reference"

    print("KERNEL_OK")
</pallas_src>

<mosaic_0001>
module attributes {stable_mosaic.version = 11 : i64} {
  func.func @_kae_fused_kernel(%arg0: i32, %arg1: memref<8x1024xf32, #tpu.memory_space<vmem>>, %arg2: memref<3x1024x32xf32, #tpu.memory_space<vmem>>, %arg3: memref<1x32xf32, #tpu.memory_space<vmem>>, %arg4: memref<96x1024xf32, #tpu.memory_space<vmem>>, %arg5: memref<1x1024xf32, #tpu.memory_space<vmem>>, %arg6: memref<8x1024xf32, #tpu.memory_space<vmem>>) attributes {dimension_semantics = [#tpu.dimension_semantics<parallel>], iteration_bounds = array<i64: 1>, scalar_prefetch = 0 : i64, scratch_operands = 0 : i64, tpu.core_type = #tpu.core_type<tc>, window_params = [{transform_indices = @transform_0, window_bounds = array<i64: 8, 1024>}, {pipeline_mode = #tpu.pipeline_mode<synchronous>, transform_indices = @transform_1, window_bounds = array<i64: 3, 1024, 32>}, {pipeline_mode = #tpu.pipeline_mode<synchronous>, transform_indices = @transform_2, window_bounds = array<i64: 1, 32>}, {pipeline_mode = #tpu.pipeline_mode<synchronous>, transform_indices = @transform_3, window_bounds = array<i64: 96, 1024>}, {pipeline_mode = #tpu.pipeline_mode<synchronous>, transform_indices = @transform_4, window_bounds = array<i64: 1, 1024>}, {transform_indices = @transform_5, window_bounds = array<i64: 8, 1024>}]} {
    %c0 = arith.constant 0 : index
    %c0_0 = arith.constant 0 : index
    %0 = vector.load %arg1[%c0, %c0_0] : memref<8x1024xf32, #tpu.memory_space<vmem>>, vector<8x1024xf32>
    %c0_1 = arith.constant 0 : index
    %c0_2 = arith.constant 0 : index
    %c0_3 = arith.constant 0 : index
    %1 = vector.load %arg2[%c0_1, %c0_2, %c0_3] : memref<3x1024x32xf32, #tpu.memory_space<vmem>>, vector<1x1024x32xf32>
    %2 = vector.shape_cast %1 : vector<1x1024x32xf32> to vector<1024x32xf32>
    %cst = arith.constant dense<0.000000e+00> : vector<8x32xf32>
    %3 = tpu.matmul %0, %2, %cst {dimension_numbers = #tpu.dot_dimension_numbers<[1], [0], [0], [1], [0, 0, 1, 1], [], []>} : vector<8x1024xf32>, vector<1024x32xf32>, vector<8x32xf32> -> vector<8x32xf32>
    %4 = arith.mulf %0, %0 : vector<8x1024xf32>
    %c1 = arith.constant 1 : index
    %c0_4 = arith.constant 0 : index
    %c0_5 = arith.constant 0 : index
    %5 = vector.load %arg2[%c1, %c0_4, %c0_5] : memref<3x1024x32xf32, #tpu.memory_space<vmem>>, vector<1x1024x32xf32>
    %6 = vector.shape_cast %5 : vector<1x1024x32xf32> to vector<1024x32xf32>
    %cst_6 = arith.constant dense<0.000000e+00> : vector<8x32xf32>
    %7 = tpu.matmul %4, %6, %cst_6 {dimension_numbers = #tpu.dot_dimension_numbers<[1], [0], [0], [1], [0, 0, 1, 1], [], []>} : vector<8x1024xf32>, vector<1024x32xf32>, vector<8x32xf32> -> vector<8x32xf32>
    %8 = arith.addf %3, %7 : vector<8x32xf32>
    %9 = arith.mulf %4, %0 : vector<8x1024xf32>
    %c2 = arith.constant 2 : index
    %c0_7 = arith.constant 0 : index
    %c0_8 = arith.constant 0 : index
    %10 = vector.load %arg2[%c2, %c0_7, %c0_8] : memref<3x1024x32xf32, #tpu.memory_space<vmem>>, vector<1x1024x32xf32>
    %11 = vector.shape_cast %10 : vector<1x1024x32xf32> to vector<1024x32xf32>
    %cst_9 = arith.constant dense<0.000000e+00> : vector<8x32xf32>
    %12 = tpu.matmul %9, %11, %cst_9 {dimension_numbers = #tpu.dot_dimension_numbers<[1], [0], [0], [1], [0, 0, 1, 1], [], []>} : vector<8x1024xf32>, vector<1024x32xf32>, vector<8x32xf32> -> vector<8x32xf32>
    %13 = arith.addf %8, %12 : vector<8x32xf32>
    %c0_10 = arith.constant 0 : index
    %c0_11 = arith.constant 0 : index
    %14 = vector.load %arg3[%c0_10, %c0_11] : memref<1x32xf32, #tpu.memory_space<vmem>>, vector<1x32xf32>
    %15 = vector.broadcast %14 : vector<1x32xf32> to vector<8x32xf32>
    %16 = arith.addf %13, %15 : vector<8x32xf32>
    %cst_12 = arith.constant 0.000000e+00 : f32
    %17 = vector.broadcast %cst_12 : f32 to vector<8x32xf32>
    %18 = arith.maximumf %16, %17 : vector<8x32xf32>
    %19 = arith.mulf %18, %18 : vector<8x32xf32>
    %20 = arith.mulf %19, %18 : vector<8x32xf32>
    %21 = tpu.concatenate %18, %19, %20 in 1 : vector<8x32xf32>, vector<8x32xf32>, vector<8x32xf32> -> vector<8x96xf32>
    %c0_13 = arith.constant 0 : index
    %c0_14 = arith.constant 0 : index
    %22 = vector.load %arg4[%c0_13, %c0_14] : memref<96x1024xf32, #tpu.memory_space<vmem>>, vector<96x1024xf32>
    %cst_15 = arith.constant dense<0.000000e+00> : vector<8x1024xf32>
    %23 = tpu.matmul %21, %22, %cst_15 {dimension_numbers = #tpu.dot_dimension_numbers<[1], [0], [0], [1], [0, 0, 1, 1], [], []>} : vector<8x96xf32>, vector<96x1024xf32>, vector<8x1024xf32> -> vector<8x1024xf32>
    %c0_16 = arith.constant 0 : index
    %c0_17 = arith.constant 0 : index
    %24 = vector.load %arg5[%c0_16, %c0_17] : memref<1x1024xf32, #tpu.memory_space<vmem>>, vector<1x1024xf32>
    %25 = vector.broadcast %24 : vector<1x1024xf32> to vector<8x1024xf32>
    %26 = arith.addf %23, %25 : vector<8x1024xf32>
    %27 = arith.negf %26 : vector<8x1024xf32>
    %28 = math.exp %27 : vector<8x1024xf32>
    %cst_18 = arith.constant 1.000000e+00 : f32
    %29 = vector.broadcast %cst_18 : f32 to vector<8x1024xf32>
    %30 = arith.addf %29, %28 : vector<8x1024xf32>
    %31 = arith.divf %29, %30 : vector<8x1024xf32>
    %c0_19 = arith.constant 0 : index
    %c0_20 = arith.constant 0 : index
    %32 = vector.load %arg6[%c0_19, %c0_20] : memref<8x1024xf32, #tpu.memory_space<vmem>>, vector<8x1024xf32>
    tpu.vector_store %arg6[%c0_19, %c0_20], %31 {strides = array<i32>} : memref<8x1024xf32, #tpu.memory_space<vmem>>, vector<8x1024xf32>,
    return
  }
  func.func @transform_0(%arg0: i32) -> (i32, i32) {
    %c0_i32 = arith.constant 0 : i32
    %c0_i32_0 = arith.constant 0 : i32
    return %arg0, %c0_i32 : i32, i32
  }
  func.func @transform_1(%arg0: i32) -> (i32, i32, i32) {
    %c0_i32 = arith.constant 0 : i32
    %c0_i32_0 = arith.constant 0 : i32
    %c0_i32_1 = arith.constant 0 : i32
    %c0_i32_2 = arith.constant 0 : i32
    return %c0_i32, %c0_i32_0, %c0_i32_1 : i32, i32, i32
  }
  func.func @transform_2(%arg0: i32) -> (i32, i32) {
    %c0_i32 = arith.constant 0 : i32
    %c0_i32_0 = arith.constant 0 : i32
    %c0_i32_1 = arith.constant 0 : i32
    return %c0_i32, %c0_i32_0 : i32, i32
  }
  func.func @transform_3(%arg0: i32) -> (i32, i32) {
    %c0_i32 = arith.constant 0 : i32
    %c0_i32_0 = arith.constant 0 : i32
    %c0_i32_1 = arith.constant 0 : i32
    return %c0_i32, %c0_i32_0 : i32, i32
  }
  func.func @transform_4(%arg0: i32) -> (i32, i32) {
    %c0_i32 = arith.constant 0 : i32
    %c0_i32_0 = arith.constant 0 : i32
    %c0_i32_1 = arith.constant 0 : i32
    return %c0_i32, %c0_i32_0 : i32, i32
  }
  func.func @transform_5(%arg0: i32) -> (i32, i32) {
    %c0_i32 = arith.constant 0 : i32
    %c0_i32_0 = arith.constant 0 : i32
    return %arg0, %c0_i32 : i32, i32
  }
}

</mosaic_0001>

<bundles_post_ra>
// kernel: tpu_custom_call.1
= control target key start
LH: loop header
LB: loop body
LE: loop exit
PB: predicated region body
PF: predicated region fallthrough
CT: control target
= control target key end

     0   :  { %s4645_s0 = inlined_call_operand.vmem [shape: f32[8,1024], index: 0, kind: input, shape index: {}]   ;;  %s4646_s1 = inlined_call_operand.vmem [shape: f32[3,1024,32], index: 1, kind: input, shape index: {}]   ;;  %s4647_s2 = inlined_call_operand.vmem [shape: f32[1,32], index: 2, kind: input, shape index: {}]   ;;  %s4648_s3 = inlined_call_operand.vmem [shape: f32[96,1024], index: 3, kind: input, shape index: {}]   ;;  %s4649_s4 = inlined_call_operand.vmem [shape: f32[1,1024], index: 4, kind: input, shape index: {}]   ;;  %s4650_s5 = inlined_call_operand.hbm [shape: f32[8,1024], index: 5, kind: output, shape index: {}]  }
   0x1   :  { %v1807_v0 = vld [vmem:[%s4646_s1 + $0x480] sm:$0xff]  ;;  %v1808_v1 = vld [vmem:[%s4646_s1 + $0x488] sm:$0xff]  ;;  %v1809_v11 = vld [vmem:[%s4646_s1 + $0x490] sm:$0xff] }
   0x2   :  { %v1839_v2 = vld [vmem:[%s4646_s1 + $0x580] sm:$0xff]  ;;  %v2480_v3 = vpack.c.bf16 %v1808_v1, %v1807_v0  ;;  %v1840_v4 = vld [vmem:[%s4646_s1 + $0x588] sm:$0xff]  ;;  %v1810_v13 = vld [vmem:[%s4646_s1 + $0x498] sm:$0xff] }
   0x3   :  { %v1791_v5 = vld [vmem:[%s4646_s1 + $0x400] sm:$0xff]  ;;  %v1792_v6 = vld [vmem:[%s4646_s1 + $0x408] sm:$0xff]  ;;  %v2512_v7 = vpack.c.bf16 %v1840_v4, %v1839_v2  ;;  %v1841_v14 = vld [vmem:[%s4646_s1 + $0x590] sm:$0xff]  ;;  %v2484_v16 = vpack.c.bf16 %v1810_v13, %v1809_v11 }
   0x4   :  { %v2482_v8 = vpack.c.bf16 %v1792_v6, %v1791_v5  ;;  %v1823_v9 = vld [vmem:[%s4646_s1 + $0x500] sm:$0xff]  ;;  %v1824_v10 = vld [vmem:[%s4646_s1 + $0x508] sm:$0xff]  ;;  %2481 = vmatprep.subr.bf16.mxu0 %v2480_v3  ;;  %v1842_v15 = vld [vmem:[%s4646_s1 + $0x598] sm:$0xff] }
   0x5   :  { %v2514_v12 = vpack.c.bf16 %v1824_v10, %v1823_v9  ;;  %2513 = vmatprep.subr.bf16.mxu1 %v2512_v7  ;;  %v2516_v17 = vpack.c.bf16 %v1842_v15, %v1841_v14  ;;  %v1793_v18 = vld [vmem:[%s4646_s1 + $0x410] sm:$0xff]  ;;  %v1794_v19 = vld [vmem:[%s4646_s1 + $0x418] sm:$0xff]  ;;  %v1811_v23 = vld [vmem:[%s4646_s1 + $0x4a0] sm:$0xff] }
   0x6   :  { %2483 = vmatpush3.bf16.msra.mxu0 %v2482_v8  ;;  %v1825_v20 = vld [vmem:[%s4646_s1 + $0x510] sm:$0xff]  ;;  %v2486_v21 = vpack.c.bf16 %v1794_v19, %v1793_v18  ;;  %v1826_v22 = vld [vmem:[%s4646_s1 + $0x518] sm:$0xff]  ;;  %v1812_v24 = vld [vmem:[%s4646_s1 + $0x4a8] sm:$0xff] }
   0x7   :  { %2515 = vmatpush3.bf16.msra.mxu1 %v2514_v12  ;;  %2485 = vmatprep.subr.bf16.mxu0 %v2484_v16  ;;  %v2518_v25 = vpack.c.bf16 %v1826_v22, %v1825_v20  ;;  %v2488_v26 = vpack.c.bf16 %v1812_v24, %v1811_v23  ;;  %v1843_v27 = vld [vmem:[%s4646_s1 + $0x5a0] sm:$0xff]  ;;  %v1844_v28 = vld [vmem:[%s4646_s1 + $0x5a8] sm:$0xff]  ;;  %v1813_v35 = vld [vmem:[%s4646_s1 + $0x4b0] sm:$0xff] }
   0x8   :  { %2517 = vmatprep.subr.bf16.mxu1 %v2516_v17  ;;  %v1795_v29 = vld [vmem:[%s4646_s1 + $0x420] sm:$0xff]  ;;  %v2520_v30 = vpack.c.bf16 %v1844_v28, %v1843_v27  ;;  %v1796_v31 = vld [vmem:[%s4646_s1 + $0x428] sm:$0xff]  ;;  %v1814_v36 = vld [vmem:[%s4646_s1 + $0x4b8] sm:$0xff] }
   0x9   :  { %v1827_v32 = vld [vmem:[%s4646_s1 + $0x520] sm:$0xff]  ;;  %v1828_v33 = vld [vmem:[%s4646_s1 + $0x528] sm:$0xff]  ;;  %v2490_v34 = vpack.c.bf16 %v1796_v31, %v1795_v29  ;;  %v1845_v37 = vld [vmem:[%s4646_s1 + $0x5b0] sm:$0xff]  ;;  %v2492_v39 = vpack.c.bf16 %v1814_v36, %v1813_v35 }
   0xa   :  { %2487 = vmatpush3.bf16.msra.mxu0 %v2486_v21  ;;  %v2522_v38 = vpack.c.bf16 %v1828_v33, %v1827_v32  ;;  %v1846_v40 = vld [vmem:[%s4646_s1 + $0x5b8] sm:$0xff]  ;;  %v1797_v41 = vld [vmem:[%s4646_s1 + $0x430] sm:$0xff]  ;;  %v1815_v46 = vld [vmem:[%s4646_s1 + $0x4c0] sm:$0xff] }
   0xb   :  { %2519 = vmatpush3.bf16.msra.mxu1 %v2518_v25  ;;  %2489 = vmatprep.subr.bf16.mxu0 %v2488_v26  ;;  %v1798_v42 = vld [vmem:[%s4646_s1 + $0x438] sm:$0xff]  ;;  %v2524_v43 = vpack.c.bf16 %v1846_v40, %v1845_v37  ;;  %v1829_v44 = vld [vmem:[%s4646_s1 + $0x530] sm:$0xff]  ;;  %v1816_v47 = vld [vmem:[%s4646_s1 + $0x4c8] sm:$0xff] }
   0xc   :  { %2521 = vmatprep.subr.bf16.mxu1 %v2520_v30  ;;  %v1830_v45 = vld [vmem:[%s4646_s1 + $0x538] sm:$0xff]  ;;  %v1847_v48 = vld [vmem:[%s4646_s1 + $0x5c0] sm:$0xff]  ;;  %v1848_v49 = vld [vmem:[%s4646_s1 + $0x5c8] sm:$0xff]  ;;  %v2494_v50 = vpack.c.bf16 %v1798_v42, %v1797_v41  ;;  %v2496_v52 = vpack.c.bf16 %v1816_v47, %v1815_v46 }
   0xd   :  { %v2526_v51 = vpack.c.bf16 %v1830_v45, %v1829_v44  ;;  %v1799_v53 = vld [vmem:[%s4646_s1 + $0x440] sm:$0xff]  ;;  %v1800_v54 = vld [vmem:[%s4646_s1 + $0x448] sm:$0xff]  ;;  %v2528_v56 = vpack.c.bf16 %v1848_v49, %v1847_v48  ;;  %v1817_v58 = vld [vmem:[%s4646_s1 + $0x4d0] sm:$0xff] }
   0xe   :  { %2491 = vmatpush3.bf16.msra.mxu0 %v2490_v34  ;;  %v1831_v55 = vld [vmem:[%s4646_s1 + $0x540] sm:$0xff]  ;;  %v1832_v57 = vld [vmem:[%s4646_s1 + $0x548] sm:$0xff]  ;;  %v1818_v59 = vld [vmem:[%s4646_s1 + $0x4d8] sm:$0xff]  ;;  %v2498_v62 = vpack.c.bf16 %v1800_v54, %v1799_v53 }
   0xf   :  { %2523 = vmatpush3.bf16.msra.mxu1 %v2522_v38  ;;  %2493 = vmatprep.subr.bf16.mxu0 %v2492_v39  ;;  %v1849_v60 = vld [vmem:[%s4646_s1 + $0x5d0] sm:$0xff]  ;;  %v1850_v61 = vld [vmem:[%s4646_s1 + $0x5d8] sm:$0xff]  ;;  %v2530_v63 = vpack.c.bf16 %v1832_v57, %v1831_v55  ;;  %v2500_v0 = vpack.c.bf16 %v1818_v59, %v1817_v58  ;;  %v1819_v6 = vld [vmem:[%s4646_s1 + $0x4e0] sm:$0xff] }
  0x10   :  { %2525 = vmatprep.subr.bf16.mxu1 %v2524_v43  ;;  %v1801_v1 = vld [vmem:[%s4646_s1 + $0x450] sm:$0xff]  ;;  %v1802_v2 = vld [vmem:[%s4646_s1 + $0x458] sm:$0xff]  ;;  %v2532_v4 = vpack.c.bf16 %v1850_v61, %v1849_v60  ;;  %v1820_v7 = vld [vmem:[%s4646_s1 + $0x4e8] sm:$0xff] }
  0x11   :  { %v1833_v3 = vld [vmem:[%s4646_s1 + $0x550] sm:$0xff]  ;;  %v1834_v5 = vld [vmem:[%s4646_s1 + $0x558] sm:$0xff]  ;;  %v1851_v8 = vld [vmem:[%s4646_s1 + $0x5e0] sm:$0xff]  ;;  %v2502_v10 = vpack.c.bf16 %v1802_v2, %v1801_v1  ;;  %v2504_v14 = vpack.c.bf16 %v1820_v7, %v1819_v6 }
  0x12   :  { %2495 = vmatpush3.bf16.msra.mxu0 %v2494_v50  ;;  %v1852_v9 = vld [vmem:[%s4646_s1 + $0x5e8] sm:$0xff]  ;;  %v1803_v11 = vld [vmem:[%s4646_s1 + $0x460] sm:$0xff]  ;;  %v2534_v13 = vpack.c.bf16 %v1834_v5, %v1833_v3  ;;  %v3231_v17 = vld [vmem:[%s4645_s0 + $0x18] sm:$0xff] }
  0x13   :  { %2527 = vmatpush3.bf16.msra.mxu1 %v2526_v51  ;;  %2497 = vmatprep.subr.bf16.mxu0 %v2496_v52  ;;  %v1804_v12 = vld [vmem:[%s4646_s1 + $0x468] sm:$0xff]  ;;  %v1835_v15 = vld [vmem:[%s4646_s1 + $0x560] sm:$0xff]  ;;  %v2536_v18 = vpack.c.bf16 %v1852_v9, %v1851_v8  ;;  %v1821_v20 = vld [vmem:[%s4646_s1 + $0x4f0] sm:$0xff]  ;;  %v160_v23 = vmul.f32 %v3231_v17, %v3231_v17 }
  0x14   :  { %2529 = vmatprep.subr.bf16.mxu1 %v2528_v56  ;;  %v3226_v16 = vld [vmem:[%s4645_s0 + $0x8] sm:$0xff]  ;;  %v1822_v21 = vld [vmem:[%s4646_s1 + $0x4f8] sm:$0xff]  ;;  %v1853_v24 = vld [vmem:[%s4646_s1 + $0x5f0] sm:$0xff]  ;;  %v2506_v26 = vpack.c.bf16 %v1804_v12, %v1803_v11 }
  0x15   :  { %v1836_v19 = vld [vmem:[%s4646_s1 + $0x568] sm:$0xff]  ;;  %v158_v22 = vmul.f32 %v3226_v16, %v3226_v16  ;;  %v1854_v25 = vld [vmem:[%s4646_s1 + $0x5f8] sm:$0xff]  ;;  %v3256_v28 = vmul.f32 %v160_v23, %v3231_v17  ;;  %v2508_v30 = vpack.c.bf16 %v1822_v21, %v1821_v20  ;;  %v1805_v31 = vld [vmem:[%s4646_s1 + $0x470] sm:$0xff]  ;;  %428 = vmatprep.mubr.f32.mxu1 %v160_v23 }
  0x16   :  { %2499 = vmatpush3.bf16.msra.mxu0 %v2498_v62  ;;  %v2538_v29 = vpack.c.bf16 %v1836_v19, %v1835_v15  ;;  %v1806_v32 = vld [vmem:[%s4646_s1 + $0x478] sm:$0xff]  ;;  %v1837_v33 = vld [vmem:[%s4646_s1 + $0x570] sm:$0xff]  ;;  %v2540_v34 = vpack.c.bf16 %v1854_v25, %v1853_v24  ;;  %v1871_v36 = vld [vmem:[%s4646_s1 + $0x680] sm:$0xff] }
  0x17   :  { %2531 = vmatpush3.bf16.msra.mxu1 %v2530_v63  ;;  %2501 = vmatprep.subr.bf16.mxu0 %v2500_v0  ;;  %v3253_v27 = vmul.f32 %v158_v22, %v3226_v16  ;;  %v1838_v35 = vld [vmem:[%s4646_s1 + $0x578] sm:$0xff]  ;;  %v1872_v37 = vld [vmem:[%s4646_s1 + $0x688] sm:$0xff]  ;;  %v1903_v38 = vld [vmem:[%s4646_s1 + $0x780] sm:$0xff]  ;;  %v2510_v40 = vpack.c.bf16 %v1806_v32, %v1805_v31 }
  0x18   :  { %2533 = vmatprep.subr.bf16.mxu1 %v2532_v4  ;;  %358 = vmatprep.mubr.f32.mxu0 %v158_v22  ;;  %v1904_v39 = vld [vmem:[%s4646_s1 + $0x788] sm:$0xff]  ;;  %v3285_v41 = vld [vmem:[%s4645_s0] sm:$0xff]  ;;  %v3290_v42 = vld [vmem:[%s4645_s0 + $0x10] sm:$0xff]  ;;  %v2542_v43 = vpack.c.bf16 %v1838_v35, %v1837_v33  ;;  %v2544_v44 = vpack.c.bf16 %v1872_v37, %v1871_v36 }
  0x19   :  { %v1855_v45 = vld [vmem:[%s4646_s1 + $0x600] sm:$0xff]  ;;  %v1856_v46 = vld [vmem:[%s4646_s1 + $0x608] sm:$0xff]  ;;  %v2576_v48 = vpack.c.bf16 %v1904_v39, %v1903_v38  ;;  %v1873_v50 = vld [vmem:[%s4646_s1 + $0x690] sm:$0xff]  ;;  %v3312_v52 = vmul.f32 %v3285_v41, %v3285_v41  ;;  %v3322_v55 = vmul.f32 %v3290_v42, %v3290_v42 }
  0x1a   :  { %2503 = vmatpush3.bf16.msra.mxu0 %v2502_v10  ;;  %v1887_v47 = vld [vmem:[%s4646_s1 + $0x700] sm:$0xff]  ;;  %v1888_v49 = vld [vmem:[%s4646_s1 + $0x708] sm:$0xff]  ;;  %v1874_v51 = vld [vmem:[%s4646_s1 + $0x698] sm:$0xff]  ;;  %v2546_v56 = vpack.c.bf16 %v1856_v46, %v1855_v45 }
  0x1b   :  { %2535 = vmatpush3.bf16.msra.mxu1 %v2534_v13  ;;  %2505 = vmatprep.subr.bf16.mxu0 %v2504_v14  ;;  %v1905_v53 = vld [vmem:[%s4646_s1 + $0x790] sm:$0xff]  ;;  %v1906_v54 = vld [vmem:[%s4646_s1 + $0x798] sm:$0xff]  ;;  %v2578_v57 = vpack.c.bf16 %v1888_v49, %v1887_v47  ;;  %v2548_v58 = vpack.c.bf16 %v1874_v51, %v1873_v50  ;;  %v1875_v0 = vld [vmem:[%s4646_s1 + $0x6a0] sm:$0xff] }
  0x1c   :  { %2537 = vmatprep.subr.bf16.mxu1 %v2536_v18  ;;  %v1857_v59 = vld [vmem:[%s4646_s1 + $0x610] sm:$0xff]  ;;  %v1858_v60 = vld [vmem:[%s4646_s1 + $0x618] sm:$0xff]  ;;  %v2580_v62 = vpack.c.bf16 %v1906_v54, %v1905_v53  ;;  %v1876_v1 = vld [vmem:[%s4646_s1 + $0x6a8] sm:$0xff] }
  0x1d   :  { %v1889_v61 = vld [vmem:[%s4646_s1 + $0x710] sm:$0xff]  ;;  %v1890_v63 = vld [vmem:[%s4646_s1 + $0x718] sm:$0xff]  ;;  %v1907_v2 = vld [vmem:[%s4646_s1 + $0x7a0] sm:$0xff]  ;;  %v2550_v4 = vpack.c.bf16 %v1858_v60, %v1857_v59  ;;  %v2552_v6 = vpack.c.bf16 %v1876_v1, %v1875_v0 }
  0x1e   :  { %2507 = vmatpush3.bf16.msra.mxu0 %v2506_v26  ;;  %v1908_v3 = vld [vmem:[%s4646_s1 + $0x7a8] sm:$0xff]  ;;  %v2582_v5 = vpack.c.bf16 %v1890_v63, %v1889_v61  ;;  %v1859_v7 = vld [vmem:[%s4646_s1 + $0x620] sm:$0xff]  ;;  %v1877_v12 = vld [vmem:[%s4646_s1 + $0x6b0] sm:$0xff] }
  0x1f   :  { %2539 = vmatpush3.bf16.msra.mxu1 %v2538_v29  ;;  %2509 = vmatprep.subr.bf16.mxu0 %v2508_v30  ;;  %v1860_v8 = vld [vmem:[%s4646_s1 + $0x628] sm:$0xff]  ;;  %v1891_v9 = vld [vmem:[%s4646_s1 + $0x720] sm:$0xff]  ;;  %v2584_v10 = vpack.c.bf16 %v1908_v3, %v1907_v2  ;;  %v1878_v13 = vld [vmem:[%s4646_s1 + $0x6b8] sm:$0xff] }
  0x20   :  { %2541 = vmatprep.subr.bf16.mxu1 %v2540_v34  ;;  %v1892_v11 = vld [vmem:[%s4646_s1 + $0x728] sm:$0xff]  ;;  %v1909_v14 = vld [vmem:[%s4646_s1 + $0x7b0] sm:$0xff]  ;;  %v1910_v15 = vld [vmem:[%s4646_s1 + $0x7b8] sm:$0xff]  ;;  %v2554_v18 = vpack.c.bf16 %v1860_v8, %v1859_v7  ;;  %v2556_v21 = vpack.c.bf16 %v1878_v13, %v1877_v12 }
  0x21   :  { %v1861_v19 = vld [vmem:[%s4646_s1 + $0x630] sm:$0xff]  ;;  %v2586_v20 = vpack.c.bf16 %v1892_v11, %v1891_v9  ;;  %v1862_v22 = vld [vmem:[%s4646_s1 + $0x638] sm:$0xff]  ;;  %v2588_v25 = vpack.c.bf16 %v1910_v15, %v1909_v14  ;;  %v1879_v26 = vld [vmem:[%s4646_s1 + $0x6c0] sm:$0xff] }
  0x22   :  { %2511 = vmatpush3.bf16.msra.mxu0 %v2510_v40  ;;  %v1893_v23 = vld [vmem:[%s4646_s1 + $0x730] sm:$0xff]  ;;  %v1894_v24 = vld [vmem:[%s4646_s1 + $0x738] sm:$0xff]  ;;  %v1880_v29 = vld [vmem:[%s4646_s1 + $0x6c8] sm:$0xff]  ;;  %v2558_v32 = vpack.c.bf16 %v1862_v22, %v1861_v19 }
  0x23   :  { %2543 = vmatpush3.bf16.msra.mxu1 %v2542_v43  ;;  %2545 = vmatprep.subr.bf16.mxu0 %v2544_v44  ;;  %v1911_v30 = vld [vmem:[%s4646_s1 + $0x7c0] sm:$0xff]  ;;  %v1912_v31 = vld [vmem:[%s4646_s1 + $0x7c8] sm:$0xff]  ;;  %v2590_v33 = vpack.c.bf16 %v1894_v24, %v1893_v23  ;;  %v3406_v35 = vld [vmem:[%s4645_s0 + $0x38] sm:$0xff]  ;;  %v2560_v36 = vpack.c.bf16 %v1880_v29, %v1879_v26 }
  0x24   :  { %2577 = vmatprep.subr.bf16.mxu1 %v2576_v48  ;;  %v3401_v34 = vld [vmem:[%s4645_s0 + $0x28] sm:$0xff]  ;;  %v1863_v37 = vld [vmem:[%s4646_s1 + $0x640] sm:$0xff]  ;;  %v3423_v43 = vmul.f32 %v3406_v35, %v3406_v35  ;;  %v2592_v44 = vpack.c.bf16 %v1912_v31, %v1911_v30  ;;  %v1881_v46 = vld [vmem:[%s4646_s1 + $0x6d0] sm:$0xff] }
  0x25   :  { %359 = vmatmul.mubr.f32.vlgmr.msra.gmra.mrb[0].mxu0 %v3312_v52  ;;  %v1864_v38 = vld [vmem:[%s4646_s1 + $0x648] sm:$0xff]  ;;  %v1895_v39 = vld [vmem:[%s4646_s1 + $0x740] sm:$0xff]  ;;  %v3419_v40 = vmul.f32 %v3401_v34, %v3401_v34  ;;  %v1882_v47 = vld [vmem:[%s4646_s1 + $0x6d8] sm:$0xff] }
  0x26   :  { %429 = vmatmul.mubr.f32.vlgmr.msra.gmra.mrb[0].mxu1 %v3322_v55  ;;  %2547 = vmatpush3.bf16.msra.mxu0 %v2546_v56  ;;  %v1896_v45 = vld [vmem:[%s4646_s1 + $0x748] sm:$0xff]  ;;  %v1913_v48 = vld [vmem:[%s4646_s1 + $0x7d0] sm:$0xff]  ;;  %v1914_v49 = vld [vmem:[%s4646_s1 + $0x7d8] sm:$0xff]  ;;  %v2562_v50 = vpack.c.bf16 %v1864_v38, %v1863_v37  ;;  %v2564_v53 = vpack.c.bf16 %v1882_v47, %v1881_v46 }
  0x27   :  { %2579 = vmatpush3.bf16.msra.mxu1 %v2578_v57  ;;  %2549 = vmatprep.subr.bf16.mxu0 %v2548_v58  ;;  %v2594_v51 = vpack.c.bf16 %v1896_v45, %v1895_v39  ;;  %v1865_v54 = vld [vmem:[%s4646_s1 + $0x650] sm:$0xff]  ;;  %v1866_v56 = vld [vmem:[%s4646_s1 + $0x658] sm:$0xff]  ;;  %v2596_v58 = vpack.c.bf16 %v1914_v49, %v1913_v48  ;;  %v1883_v60 = vld [vmem:[%s4646_s1 + $0x6e0] sm:$0xff] }
  0x28   :  { %2581 = vmatprep.subr.bf16.mxu1 %v2580_v62  ;;  %498 = vmatprep.mubr.f32.mxu0 %v3419_v40  ;;  %v1897_v57 = vld [vmem:[%s4646_s1 + $0x750] sm:$0xff]  ;;  %v1898_v59 = vld [vmem:[%s4646_s1 + $0x758] sm:$0xff]  ;;  %v1884_v61 = vld [vmem:[%s4646_s1 + $0x6e8] sm:$0xff]  ;;  %v2566_v0 = vpack.c.bf16 %v1866_v56, %v1865_v54 }
  0x29   :  { %568 = vmatprep.mubr.f32.mxu1 %v3423_v43  ;;  %v1915_v62 = vld [vmem:[%s4646_s1 + $0x7e0] sm:$0xff]  ;;  %v1916_v63 = vld [vmem:[%s4646_s1 + $0x7e8] sm:$0xff]  ;;  %v2598_v1 = vpack.c.bf16 %v1898_v59, %v1897_v57  ;;  %v2568_v2 = vpack.c.bf16 %v1884_v61, %v1883_v60  ;;  %v1885_v8 = vld [vmem:[%s4646_s1 + $0x6f0] sm:$0xff] }
  0x2a   :  { %2551 = vmatpush3.bf16.msra.mxu0 %v2550_v4  ;;  %v1867_v3 = vld [vmem:[%s4646_s1 + $0x660] sm:$0xff]  ;;  %v1868_v4 = vld [vmem:[%s4646_s1 + $0x668] sm:$0xff]  ;;  %v1886_v9 = vld [vmem:[%s4646_s1 + $0x6f8] sm:$0xff] }
  0x2b   :  { %2583 = vmatpush3.bf16.msra.mxu1 %v2582_v5  ;;  %2553 = vmatprep.subr.bf16.mxu0 %v2552_v6  ;;  %v1899_v5 = vld [vmem:[%s4646_s1 + $0x760] sm:$0xff]  ;;  %v2600_v6 = vpack.c.bf16 %v1916_v63, %v1915_v62  ;;  %v1900_v7 = vld [vmem:[%s4646_s1 + $0x768] sm:$0xff]  ;;  %v1918_v11 = vld [vmem:[%s4646_s1 + $0x7f8] sm:$0xff]  ;;  %v2570_v12 = vpack.c.bf16 %v1868_v4, %v1867_v3  ;;  %v2572_v14 = vpack.c.bf16 %v1886_v9, %v1885_v8 }
  0x2c   :  { %2585 = vmatprep.subr.bf16.mxu1 %v2584_v10  ;;  %v1917_v10 = vld [vmem:[%s4646_s1 + $0x7f0] sm:$0xff]  ;;  %v2602_v13 = vpack.c.bf16 %v1900_v7, %v1899_v5  ;;  %v45_v22 = vld [vmem:[%s4646_s1 + $0x80] sm:$0xff]  ;;  %v46_v23 = vld [vmem:[%s4646_s1 + $0x88] sm:$0xff]  ;;  %v3580_v63 = vmul.f32 %v3423_v43, %v3406_v35 }
  0x2d   :  { %v1869_v15 = vld [vmem:[%s4646_s1 + $0x670] sm:$0xff]  ;;  %v77_v24 = vld [vmem:[%s4646_s1 + $0x180] sm:$0xff]  ;;  %v62_v39 = vld [vmem:[%s4646_s1 + $0x108] sm:$0xff] }
  0x2e   :  { %2555 = vmatpush3.bf16.msra.mxu0 %v2554_v18  ;;  %v1870_v18 = vld [vmem:[%s4646_s1 + $0x678] sm:$0xff]  ;;  %v1901_v19 = vld [vmem:[%s4646_s1 + $0x770] sm:$0xff]  ;;  %v3517_v29 = vld [vmem:[%s4645_s0 + $0x20] sm:$0xff] }
  0x2f   :  { %2587 = vmatpush3.bf16.msra.mxu1 %v2586_v20  ;;  %2557 = vmatprep.subr.bf16.mxu0 %v2556_v21  ;;  %v2604_v20 = vpack.c.bf16 %v1918_v11, %v1917_v10  ;;  %v1902_v21 = vld [vmem:[%s4646_s1 + $0x778] sm:$0xff]  ;;  %v2574_v26 = vpack.c.bf16 %v1870_v18, %v1869_v15  ;;  %v3522_v30 = vld [vmem:[%s4645_s0 + $0x30] sm:$0xff]  ;;  %v61_v37 = vld [vmem:[%s4646_s1 + $0x100] sm:$0xff]  ;;  %v3544_v46 = vmul.f32 %v3517_v29, %v3517_v29 }
  0x30   :  { %2589 = vmatprep.subr.bf16.mxu1 %v2588_v25  ;;  %v78_v25 = vld [vmem:[%s4646_s1 + $0x188] sm:$0xff]  ;;  %v2606_v31 = vpack.c.bf16 %v1902_v21, %v1901_v19  ;;  %v48_v45 = vld [vmem:[%s4646_s1 + $0x98] sm:$0xff]  ;;  %v79_v47 = vld [vmem:[%s4646_s1 + $0x190] sm:$0xff]  ;;  %v3554_v49 = vmul.f32 %v3522_v30, %v3522_v30 }
  0x31   :  { %v2640_v38 = vpack.c.bf16 %v78_v25, %v77_v24  ;;  %v80_v48 = vld [vmem:[%s4646_s1 + $0x198] sm:$0xff]  ;;  %v31_v54 = vld [vmem:[%s4646_s1 + $0x10] sm:$0xff]  ;;  %v49_v61 = vld [vmem:[%s4646_s1 + $0xa0] sm:$0xff] }
  0x32   :  { %2559 = vmatpush3.bf16.msra.mxu0 %v2558_v32  ;;  %v2608_v32 = vpack.c.bf16 %v46_v23, %v45_v22  ;;  %v32_v56 = vld [vmem:[%s4646_s1 + $0x18] sm:$0xff]  ;;  %v63_v57 = vld [vmem:[%s4646_s1 + $0x110] sm:$0xff]  ;;  %v2644_v59 = vpack.c.bf16 %v80_v48, %v79_v47  ;;  %v50_v62 = vld [vmem:[%s4646_s1 + $0xa8] sm:$0xff] }
  0x33   :  { %2591 = vmatpush3.bf16.msra.mxu1 %v2590_v33  ;;  %2561 = vmatprep.subr.bf16.mxu0 %v2560_v36  ;;  %v29_v33 = vld [vmem:[%s4646_s1] sm:$0xff]  ;;  %v30_v36 = vld [vmem:[%s4646_s1 + $0x8] sm:$0xff]  ;;  %v64_v60 = vld [vmem:[%s4646_s1 + $0x118] sm:$0xff]  ;;  %v2616_v3 = vpack.c.bf16 %v50_v62, %v49_v61 }
  0x34   :  { %2593 = vmatprep.subr.bf16.mxu1 %v2592_v44  ;;  %v47_v44 = vld [vmem:[%s4646_s1 + $0x90] sm:$0xff]  ;;  %v33_v43 = vld [vmem:[%s4646_s1 + $0x20] sm:$0xff]  ;;  %v34_v4 = vld [vmem:[%s4646_s1 + $0x28] sm:$0xff] }
  0x35   :  { %v65_v5 = vld [vmem:[%s4646_s1 + $0x120] sm:$0xff]  ;;  %v66_v7 = vld [vmem:[%s4646_s1 + $0x128] sm:$0xff]  ;;  %v51_v8 = vld [vmem:[%s4646_s1 + $0xb0] sm:$0xff] }
  0x36   :  { %2563 = vmatpush3.bf16.msra.mxu0 %v2562_v50  ;;  %v2610_v50 = vpack.c.bf16 %v30_v36, %v29_v33  ;;  %v52_v9 = vld [vmem:[%s4646_s1 + $0xb8] sm:$0xff]  ;;  %v83_v10 = vld [vmem:[%s4646_s1 + $0x1b0] sm:$0xff]  ;;  %v54_v21 = vld [vmem:[%s4646_s1 + $0xc8] sm:$0xff] }
  0x37   :  { %2595 = vmatpush3.bf16.msra.mxu1 %v2594_v51  ;;  %2565 = vmatprep.subr.bf16.mxu0 %v2564_v53  ;;  %v2642_v51 = vpack.c.bf16 %v62_v39, %v61_v37  ;;  %v2612_v53 = vpack.c.bf16 %v48_v45, %v47_v44  ;;  %v84_v11 = vld [vmem:[%s4646_s1 + $0x1b8] sm:$0xff]  ;;  %v67_v18 = vld [vmem:[%s4646_s1 + $0x130] sm:$0xff]  ;;  %v85_v22 = vld [vmem:[%s4646_s1 + $0x1c0] sm:$0xff] }
  0x38   :  { %2597 = vmatprep.subr.bf16.mxu1 %v2596_v58  ;;  %v3567_v58 = vmul.f32 %v3419_v40, %v3401_v34  ;;  %v81_v40 = vld [vmem:[%s4646_s1 + $0x1a0] sm:$0xff]  ;;  %v36_v15 = vld [vmem:[%s4646_s1 + $0x38] sm:$0xff]  ;;  %v86_v23 = vld [vmem:[%s4646_s1 + $0x1c8] sm:$0xff] }
  0x39   :  { %v68_v19 = vld [vmem:[%s4646_s1 + $0x138] sm:$0xff]  ;;  %v69_v33 = vld [vmem:[%s4646_s1 + $0x140] sm:$0xff]  ;;  %v2656_v36 = vpack.c.bf16 %v86_v23, %v85_v22  ;;  %v70_v37 = vld [vmem:[%s4646_s1 + $0x148] sm:$0xff] }
  0x3a   :  { %2567 = vmatpush3.bf16.msra.mxu0 %v2566_v0  ;;  %v82_v0 = vld [vmem:[%s4646_s1 + $0x1a8] sm:$0xff]  ;;  %v2654_v25 = vpack.c.bf16 %v68_v19, %v67_v18  ;;  %v56_v39 = vld [vmem:[%s4646_s1 + $0xd8] sm:$0xff]  ;;  %v87_v44 = vld [vmem:[%s4646_s1 + $0x1d0] sm:$0xff]  ;;  %v2658_v48 = vpack.c.bf16 %v70_v37, %v69_v33 }
  0x3b   :  { %2599 = vmatpush3.bf16.msra.mxu1 %v2598_v1  ;;  %2569 = vmatprep.subr.bf16.mxu0 %v2568_v2  ;;  %v2614_v1 = vpack.c.bf16 %v32_v56, %v31_v54  ;;  %v2646_v2 = vpack.c.bf16 %v64_v60, %v63_v57  ;;  %v88_v45 = vld [vmem:[%s4646_s1 + $0x1d8] sm:$0xff]  ;;  %v71_v54 = vld [vmem:[%s4646_s1 + $0x150] sm:$0xff]  ;;  %v58_v60 = vld [vmem:[%s4646_s1 + $0xe8] sm:$0xff] }
  0x3c   :  { %2601 = vmatprep.subr.bf16.mxu1 %v2600_v6  ;;  %v2648_v6 = vpack.c.bf16 %v82_v0, %v81_v40  ;;  %v2660_v56 = vpack.c.bf16 %v88_v45, %v87_v44  ;;  %v72_v57 = vld [vmem:[%s4646_s1 + $0x158] sm:$0xff]  ;;  %v89_v61 = vld [vmem:[%s4646_s1 + $0x1e0] sm:$0xff]  ;;  %v90_v62 = vld [vmem:[%s4646_s1 + $0x1e8] sm:$0xff] }
  0x3d   :  { %v2662_v0 = vpack.c.bf16 %v72_v57, %v71_v54  ;;  %v76_v18 = vld [vmem:[%s4646_s1 + $0x178] sm:$0xff]  ;;  %v110_v19 = vld [vmem:[%s4646_s1 + $0x288] sm:$0xff] }
  0x3e   :  { %2571 = vmatpush3.bf16.msra.mxu0 %v2570_v12  ;;  %v2618_v12 = vpack.c.bf16 %v34_v4, %v33_v43  ;;  %v73_v43 = vld [vmem:[%s4646_s1 + $0x160] sm:$0xff]  ;;  %v2664_v4 = vpack.c.bf16 %v90_v62, %v89_v61  ;;  %v126_v33 = vld [vmem:[%s4646_s1 + $0x308] sm:$0xff]  ;;  %v112_v37 = vld [vmem:[%s4646_s1 + $0x298] sm:$0xff] }
  0x3f   :  { %2603 = vmatpush3.bf16.msra.mxu1 %v2602_v13  ;;  %2573 = vmatprep.subr.bf16.mxu0 %v2572_v14  ;;  %v2650_v13 = vpack.c.bf16 %v66_v7, %v65_v5  ;;  %v2620_v14 = vpack.c.bf16 %v52_v9, %v51_v8  ;;  %v74_v5 = vld [vmem:[%s4646_s1 + $0x168] sm:$0xff]  ;;  %v60_v7 = vld [vmem:[%s4646_s1 + $0xf8] sm:$0xff]  ;;  %v91_v8 = vld [vmem:[%s4646_s1 + $0x1f0] sm:$0xff] }
  0x40   :  { %2605 = vmatprep.subr.bf16.mxu1 %v2604_v20  ;;  %v53_v20 = vld [vmem:[%s4646_s1 + $0xc0] sm:$0xff]  ;;  %v92_v9 = vld [vmem:[%s4646_s1 + $0x1f8] sm:$0xff]  ;;  %v114_v57 = vld [vmem:[%s4646_s1 + $0x2a8] sm:$0xff] }
  0x41   :  { %v128_v54 = vld [vmem:[%s4646_s1 + $0x318] sm:$0xff] }
  0x42   :  { %2575 = vmatpush3.bf16.msra.mxu0 %v2574_v26  ;;  %v2624_v26 = vpack.c.bf16 %v54_v21, %v53_v20  ;;  %v141_v20 = vld [vmem:[%s4646_s1 + $0x380] sm:$0xff]  ;;  %v142_v21 = vld [vmem:[%s4646_s1 + $0x388] sm:$0xff] }
  0x43   :  { %2607 = vmatpush3.bf16.msra.mxu1 %v2606_v31  ;;  %2609 = vmatprep.subr.bf16.mxu0 %v2608_v32  ;;  %v37_v31 = vld [vmem:[%s4646_s1 + $0x40] sm:$0xff]  ;;  %v38_v32 = vld [vmem:[%s4646_s1 + $0x48] sm:$0xff] }
  0x44   :  { %2641 = vmatprep.subr.bf16.mxu1 %v2640_v38  ;;  %v55_v38 = vld [vmem:[%s4646_s1 + $0xd0] sm:$0xff]  ;;  %v2626_v47 = vpack.c.bf16 %v38_v32, %v37_v31  ;;  %v125_v31 = vld [vmem:[%s4646_s1 + $0x300] sm:$0xff]  ;;  %v2704_v32 = vpack.c.bf16 %v142_v21, %v141_v20  ;;  %v102_v20 = vld [vmem:[%s4646_s1 + $0x248] sm:$0xff] }
  0x45   :  { %499 = vmatmul.mubr.f32.vlgmr.msra.gmra.mrb[2].mxu0 %v3544_v46  ;;  %v2706_v45 = vpack.c.bf16 %v126_v33, %v125_v31  ;;  %v133_v21 = vld [vmem:[%s4646_s1 + $0x340] sm:$0xff]  ;;  %v152_v31 = vld [vmem:[%s4646_s1 + $0x3d8] sm:$0xff] }
  0x46   :  { %569 = vmatmul.mubr.f32.vlgmr.msra.gmra.mrb[2].mxu1 %v3554_v49  ;;  %2611 = vmatpush3.bf16.msra.mxu0 %v2610_v50  ;;  %v2628_v50 = vpack.c.bf16 %v56_v39, %v55_v38  ;;  %v143_v38 = vld [vmem:[%s4646_s1 + $0x390] sm:$0xff]  ;;  %v144_v39 = vld [vmem:[%s4646_s1 + $0x398] sm:$0xff] }
  0x47   :  { %2643 = vmatpush3.bf16.msra.mxu1 %v2642_v51  ;;  %2613 = vmatprep.subr.bf16.mxu0 %v2612_v53  ;;  %v39_v51 = vld [vmem:[%s4646_s1 + $0x50] sm:$0xff]  ;;  %v40_v53 = vld [vmem:[%s4646_s1 + $0x58] sm:$0xff] }
  0x48   :  { %2645 = vmatprep.subr.bf16.mxu1 %v2644_v59  ;;  %638 = vmatprep.mubr.f32.mxu0 %v3226_v16  ;;  %v35_v16 = vld [vmem:[%s4646_s1 + $0x30] sm:$0xff]  ;;  %v57_v59 = vld [vmem:[%s4646_s1 + $0xe0] sm:$0xff]  ;;  %v2630_v40 = vpack.c.bf16 %v40_v53, %v39_v51  ;;  %v2708_v53 = vpack.c.bf16 %v144_v39, %v143_v38  ;;  %v104_v38 = vld [vmem:[%s4646_s1 + $0x258] sm:$0xff] }
  0x49   :  { %708 = vmatprep.mubr.f32.mxu1 %v3231_v17  ;;  %v2652_v17 = vpack.c.bf16 %v84_v11, %v83_v10  ;;  %v2622_v24 = vpack.c.bf16 %v36_v15, %v35_v16  ;;  %v2666_v11 = vpack.c.bf16 %v74_v5, %v73_v43  ;;  %v75_v16 = vld [vmem:[%s4646_s1 + $0x170] sm:$0xff]  ;;  %v2668_v15 = vpack.c.bf16 %v92_v9, %v91_v8  ;;  %v116_v43 = vld [vmem:[%s4646_s1 + $0x2b8] sm:$0xff] }
  0x4a   :  { %2615 = vmatpush3.bf16.msra.mxu0 %v2614_v1  ;;  %v2632_v1 = vpack.c.bf16 %v58_v60, %v57_v59  ;;  %v2670_v23 = vpack.c.bf16 %v76_v18, %v75_v16  ;;  %v127_v51 = vld [vmem:[%s4646_s1 + $0x310] sm:$0xff]  ;;  %v145_v59 = vld [vmem:[%s4646_s1 + $0x3a0] sm:$0xff]  ;;  %v146_v60 = vld [vmem:[%s4646_s1 + $0x3a8] sm:$0xff] }
  0x4b   :  { %2647 = vmatpush3.bf16.msra.mxu1 %v2646_v2  ;;  %2617 = vmatprep.subr.bf16.mxu0 %v2616_v3  ;;  %v41_v2 = vld [vmem:[%s4646_s1 + $0x60] sm:$0xff]  ;;  %v42_v3 = vld [vmem:[%s4646_s1 + $0x68] sm:$0xff]  ;;  %v2710_v62 = vpack.c.bf16 %v128_v54, %v127_v51  ;;  %v148_v5 = vld [vmem:[%s4646_s1 + $0x3b8] sm:$0xff] }
  0x4c   :  { %2649 = vmatprep.subr.bf16.mxu1 %v2648_v6  ;;  %v59_v6 = vld [vmem:[%s4646_s1 + $0xf0] sm:$0xff]  ;;  %v2634_v10 = vpack.c.bf16 %v42_v3, %v41_v2  ;;  %v130_v2 = vld [vmem:[%s4646_s1 + $0x328] sm:$0xff]  ;;  %v100_v9 = vld [vmem:[%s4646_s1 + $0x238] sm:$0xff] }
  0x4d   :  { %v115_v3 = vld [vmem:[%s4646_s1 + $0x2b0] sm:$0xff]  ;;  %v150_v16 = vld [vmem:[%s4646_s1 + $0x3c8] sm:$0xff] }
  0x4e   :  { %2619 = vmatpush3.bf16.msra.mxu0 %v2618_v12  ;;  %v2636_v12 = vpack.c.bf16 %v60_v7, %v59_v6  ;;  %v2684_v8 = vpack.c.bf16 %v116_v43, %v115_v3  ;;  %v135_v39 = vld [vmem:[%s4646_s1 + $0x350] sm:$0xff]  ;;  %v154_v51 = vld [vmem:[%s4646_s1 + $0x3e8] sm:$0xff] }
  0x4f   :  { %2651 = vmatpush3.bf16.msra.mxu1 %v2650_v13  ;;  %2621 = vmatprep.subr.bf16.mxu0 %v2620_v14  ;;  %v43_v13 = vld [vmem:[%s4646_s1 + $0x70] sm:$0xff]  ;;  %v44_v14 = vld [vmem:[%s4646_s1 + $0x78] sm:$0xff] }
  0x50   :  { %2653 = vmatprep.subr.bf16.mxu1 %v2652_v17  ;;  %v109_v17 = vld [vmem:[%s4646_s1 + $0x280] sm:$0xff]  ;;  %v2638_v22 = vpack.c.bf16 %v44_v14, %v43_v13  ;;  %v118_v13 = vld [vmem:[%s4646_s1 + $0x2c8] sm:$0xff]  ;;  %v107_v43 = vld [vmem:[%s4646_s1 + $0x270] sm:$0xff] }
  0x51   :  { %v149_v14 = vld [vmem:[%s4646_s1 + $0x3c0] sm:$0xff] }
  0x52   :  { %2623 = vmatpush3.bf16.msra.mxu0 %v2622_v24  ;;  %v2672_v24 = vpack.c.bf16 %v110_v19, %v109_v17  ;;  %v101_v19 = vld [vmem:[%s4646_s1 + $0x240] sm:$0xff] }
  0x53   :  { %2655 = vmatpush3.bf16.msra.mxu1 %v2654_v25  ;;  %2625 = vmatprep.subr.bf16.mxu0 %v2624_v26  ;;  %v93_v25 = vld [vmem:[%s4646_s1 + $0x200] sm:$0xff]  ;;  %v94_v26 = vld [vmem:[%s4646_s1 + $0x208] sm:$0xff] }
  0x54   :  { %2657 = vmatprep.subr.bf16.mxu1 %v2656_v36  ;;  %v111_v36 = vld [vmem:[%s4646_s1 + $0x290] sm:$0xff]  ;;  %v2674_v44 = vpack.c.bf16 %v94_v26, %v93_v25  ;;  %v120_v25 = vld [vmem:[%s4646_s1 + $0x2d8] sm:$0xff] }
  0x55   :  { %v151_v26 = vld [vmem:[%s4646_s1 + $0x3d0] sm:$0xff] }
  0x56   :  { %2627 = vmatpush3.bf16.msra.mxu0 %v2626_v47  ;;  %v2676_v47 = vpack.c.bf16 %v112_v37, %v111_v36  ;;  %v103_v37 = vld [vmem:[%s4646_s1 + $0x250] sm:$0xff] }
  0x57   :  { %2659 = vmatpush3.bf16.msra.mxu1 %v2658_v48  ;;  %2629 = vmatprep.subr.bf16.mxu0 %v2628_v50  ;;  %v95_v48 = vld [vmem:[%s4646_s1 + $0x210] sm:$0xff]  ;;  %v96_v50 = vld [vmem:[%s4646_s1 + $0x218] sm:$0xff] }
  0x58   :  { %2661 = vmatprep.subr.bf16.mxu1 %v2660_v56  ;;  %v113_v56 = vld [vmem:[%s4646_s1 + $0x2a0] sm:$0xff]  ;;  %v2678_v61 = vpack.c.bf16 %v96_v50, %v95_v48  ;;  %v122_v48 = vld [vmem:[%s4646_s1 + $0x2e8] sm:$0xff] }
  0x59   :  { %v153_v50 = vld [vmem:[%s4646_s1 + $0x3e0] sm:$0xff] }
  0x5a   :  { %2631 = vmatpush3.bf16.msra.mxu0 %v2630_v40  ;;  %v2680_v40 = vpack.c.bf16 %v114_v57, %v113_v56  ;;  %v105_v57 = vld [vmem:[%s4646_s1 + $0x260] sm:$0xff] }
  0x5b   :  { %2663 = vmatpush3.bf16.msra.mxu1 %v2662_v0  ;;  %2633 = vmatprep.subr.bf16.mxu0 %v2632_v1  ;;  %v98_v0 = vld [vmem:[%s4646_s1 + $0x228] sm:$0xff]  ;;  %v129_v1 = vld [vmem:[%s4646_s1 + $0x320] sm:$0xff] }
  0x5c   :  { %2665 = vmatprep.subr.bf16.mxu1 %v2664_v4  ;;  %v147_v4 = vld [vmem:[%s4646_s1 + $0x3b0] sm:$0xff]  ;;  %v2714_v7 = vpack.c.bf16 %v130_v2, %v129_v1  ;;  %v156_v1 = vld [vmem:[%s4646_s1 + $0x3f8] sm:$0xff] }
  0x5e   :  { %2635 = vmatpush3.bf16.msra.mxu0 %v2634_v10  ;;  %v131_v10 = vld [vmem:[%s4646_s1 + $0x330] sm:$0xff] }
  0x5f   :  { %2667 = vmatpush3.bf16.msra.mxu1 %v2666_v11  ;;  %2637 = vmatprep.subr.bf16.mxu0 %v2636_v12  ;;  %v132_v11 = vld [vmem:[%s4646_s1 + $0x338] sm:$0xff]  ;;  %v117_v12 = vld [vmem:[%s4646_s1 + $0x2c0] sm:$0xff] }
  0x60   :  { %2669 = vmatprep.subr.bf16.mxu1 %v2668_v15  ;;  %v2718_v18 = vpack.c.bf16 %v132_v11, %v131_v10  ;;  %v2688_v17 = vpack.c.bf16 %v118_v13, %v117_v12  ;;  %v1968_v10 = vld [vmem:[%s4646_s1 + $0x988] sm:$0xff]  ;;  %v1919_v13 = vld [vmem:[%s4646_s1 + $0x800] sm:$0xff] }
  0x62   :  { %2639 = vmatpush3.bf16.msra.mxu0 %v2638_v22  ;;  %v2720_v22 = vpack.c.bf16 %v150_v16, %v149_v14  ;;  %v1920_v14 = vld [vmem:[%s4646_s1 + $0x808] sm:$0xff]  ;;  %v1951_v16 = vld [vmem:[%s4646_s1 + $0x900] sm:$0xff] }
  0x63   :  { %2671 = vmatpush3.bf16.msra.mxu1 %v2670_v23  ;;  %2673 = vmatprep.subr.bf16.mxu0 %v2672_v24  ;;  %v134_v23 = vld [vmem:[%s4646_s1 + $0x348] sm:$0xff]  ;;  %v119_v24 = vld [vmem:[%s4646_s1 + $0x2d0] sm:$0xff] }
  0x64   :  { %2705 = vmatprep.subr.bf16.mxu1 %v2704_v32  ;;  %v2690_v32 = vpack.c.bf16 %v102_v20, %v101_v19  ;;  %v2722_v33 = vpack.c.bf16 %v134_v23, %v133_v21  ;;  %v2692_v36 = vpack.c.bf16 %v120_v25, %v119_v24  ;;  %v1938_v19 = vld [vmem:[%s4646_s1 + $0x898] sm:$0xff]  ;;  %v1969_v20 = vld [vmem:[%s4646_s1 + $0x990] sm:$0xff] }
  0x65   :  { %639 = vmatmul.mubr.f32.vlgmr.msra.gmra.mrb[4].mxu0 %v3285_v41  ;;  %v97_v41 = vld [vmem:[%s4646_s1 + $0x220] sm:$0xff]  ;;  %v1970_v21 = vld [vmem:[%s4646_s1 + $0x998] sm:$0xff]  ;;  %v1921_v23 = vld [vmem:[%s4646_s1 + $0x810] sm:$0xff] }
  0x66   :  { %709 = vmatmul.mubr.f32.vlgmr.msra.gmra.mrb[4].mxu1 %v3290_v42  ;;  %2675 = vmatpush3.bf16.msra.mxu0 %v2674_v44  ;;  %v2712_v42 = vpack.c.bf16 %v146_v60, %v145_v59  ;;  %v2682_v6 = vpack.c.bf16 %v98_v0, %v97_v41  ;;  %v2724_v44 = vpack.c.bf16 %v152_v31, %v151_v26  ;;  %v106_v59 = vld [vmem:[%s4646_s1 + $0x268] sm:$0xff]  ;;  %v137_v60 = vld [vmem:[%s4646_s1 + $0x360] sm:$0xff]  ;;  %v124_v41 = vld [vmem:[%s4646_s1 + $0x2f8] sm:$0xff] }
  0x67   :  { %2707 = vmatpush3.bf16.msra.mxu1 %v2706_v45  ;;  %2677 = vmatprep.subr.bf16.mxu0 %v2676_v47  ;;  %v136_v45 = vld [vmem:[%s4646_s1 + $0x358] sm:$0xff]  ;;  %v121_v47 = vld [vmem:[%s4646_s1 + $0x2e0] sm:$0xff]  ;;  %v155_v0 = vld [vmem:[%s4646_s1 + $0x3f0] sm:$0xff] }
  0x68   :  { %2709 = vmatprep.subr.bf16.mxu1 %v2708_v53  ;;  %778 = vmatprep.mubr.f32.mxu0 %v3401_v34  ;;  %v99_v34 = vld [vmem:[%s4646_s1 + $0x230] sm:$0xff]  ;;  %v2694_v53 = vpack.c.bf16 %v104_v38, %v103_v37  ;;  %v2726_v54 = vpack.c.bf16 %v136_v45, %v135_v39  ;;  %v2696_v56 = vpack.c.bf16 %v122_v48, %v121_v47  ;;  %v1922_v26 = vld [vmem:[%s4646_s1 + $0x818] sm:$0xff]  ;;  %v1940_v37 = vld [vmem:[%s4646_s1 + $0x8a8] sm:$0xff] }
  0x69   :  { %848 = vmatprep.mubr.f32.mxu1 %v3406_v35  ;;  %v2716_v35 = vpack.c.bf16 %v148_v5, %v147_v4  ;;  %v2686_v15 = vpack.c.bf16 %v100_v9, %v99_v34  ;;  %v108_v4 = vld [vmem:[%s4646_s1 + $0x278] sm:$0xff]  ;;  %v139_v5 = vld [vmem:[%s4646_s1 + $0x370] sm:$0xff]  ;;  %v1936_v34 = vld [vmem:[%s4646_s1 + $0x888] sm:$0xff] }
  0x6a   :  { %2679 = vmatpush3.bf16.msra.mxu0 %v2678_v61  ;;  %v2728_v61 = vpack.c.bf16 %v154_v51, %v153_v50  ;;  %v1967_v9 = vld [vmem:[%s4646_s1 + $0x980] sm:$0xff]  ;;  %v1953_v31 = vld [vmem:[%s4646_s1 + $0x910] sm:$0xff] }
  0x6b   :  { %2711 = vmatpush3.bf16.msra.mxu1 %v2710_v62  ;;  %2681 = vmatprep.subr.bf16.mxu0 %v2680_v40  ;;  %v138_v62 = vld [vmem:[%s4646_s1 + $0x368] sm:$0xff]  ;;  %v123_v40 = vld [vmem:[%s4646_s1 + $0x2f0] sm:$0xff] }
  0x6c   :  { %2713 = vmatprep.subr.bf16.mxu1 %v2712_v42  ;;  %v2698_v42 = vpack.c.bf16 %v106_v59, %v105_v57  ;;  %v2730_v2 = vpack.c.bf16 %v138_v62, %v137_v60  ;;  %v2700_v3 = vpack.c.bf16 %v124_v41, %v123_v40 }
  0x6e   :  { %2683 = vmatpush3.bf16.msra.mxu0 %v2682_v6  ;;  %v2732_v6 = vpack.c.bf16 %v156_v1, %v155_v0 }
  0x6f   :  { %2715 = vmatpush3.bf16.msra.mxu1 %v2714_v7  ;;  %2685 = vmatprep.subr.bf16.mxu0 %v2684_v8  ;;  %v140_v7 = vld [vmem:[%s4646_s1 + $0x378] sm:$0xff]  ;;  %v1935_v8 = vld [vmem:[%s4646_s1 + $0x880] sm:$0xff] }
  0x70   :  { %2717 = vmatprep.subr.bf16.mxu1 %v2716_v35  ;;  %v2702_v35 = vpack.c.bf16 %v108_v4, %v107_v43  ;;  %v2734_v11 = vpack.c.bf16 %v140_v7, %v139_v5  ;;  %v2736_v12 = vpack.c.bf16 %v1936_v34, %v1935_v8 }
  0x72   :  { %2687 = vmatpush3.bf16.msra.mxu0 %v2686_v15  ;;  %v2768_v15 = vpack.c.bf16 %v1968_v10, %v1967_v9 }
  0x73   :  { %2719 = vmatpush3.bf16.msra.mxu1 %v2718_v18  ;;  %2689 = vmatprep.subr.bf16.mxu0 %v2688_v17  ;;  %v1952_v18 = vld [vmem:[%s4646_s1 + $0x908] sm:$0xff]  ;;  %v1937_v17 = vld [vmem:[%s4646_s1 + $0x890] sm:$0xff] }
  0x74   :  { %2721 = vmatprep.subr.bf16.mxu1 %v2720_v22  ;;  %v2738_v22 = vpack.c.bf16 %v1920_v14, %v1919_v13  ;;  %v2770_v24 = vpack.c.bf16 %v1952_v18, %v1951_v16  ;;  %v2740_v25 = vpack.c.bf16 %v1938_v19, %v1937_v17 }
  0x76   :  { %2691 = vmatpush3.bf16.msra.mxu0 %v2690_v32  ;;  %v1954_v32 = vld [vmem:[%s4646_s1 + $0x918] sm:$0xff] }
  0x77   :  { %2723 = vmatpush3.bf16.msra.mxu1 %v2722_v33  ;;  %2693 = vmatprep.subr.bf16.mxu0 %v2692_v36  ;;  %v2772_v33 = vpack.c.bf16 %v1970_v21, %v1969_v20  ;;  %v1939_v36 = vld [vmem:[%s4646_s1 + $0x8a0] sm:$0xff] }
  0x78   :  { %2725 = vmatprep.subr.bf16.mxu1 %v2724_v44 }
  0x7a   :  { %2695 = vmatpush3.bf16.msra.mxu0 %v2694_v53 }
  0x7b   :  { %2727 = vmatpush3.bf16.msra.mxu1 %v2726_v54  ;;  %2697 = vmatprep.subr.bf16.mxu0 %v2696_v56 }
  0x7c   :  { %2729 = vmatprep.subr.bf16.mxu1 %v2728_v61 }
  0x7e   :  { %2699 = vmatpush3.bf16.msra.mxu0 %v2698_v42 }
  0x7f   :  { %2731 = vmatpush3.bf16.msra.mxu1 %v2730_v2  ;;  %2701 = vmatprep.subr.bf16.mxu0 %v2700_v3 }
  0x80   :  { %2733 = vmatprep.subr.bf16.mxu1 %v2732_v6 }
  0x82   :  { %2703 = vmatpush3.bf16.msra.mxu0 %v2702_v35 }
  0x83   :  { %2735 = vmatpush3.bf16.msra.mxu1 %v2734_v11  ;;  %2737 = vmatprep.subr.bf16.mxu0 %v2736_v12 }
  0x84   :  { %2769 = vmatprep.subr.bf16.mxu1 %v2768_v15 }
  0x85   :  { %10 = vsyncpa [#allocation3], 0  ;;  %779 = vmatmul.mubr.f32.vlgmr.msra.gmra.mrb[6].mxu0 %v3517_v29  ;;  %v1971_v38 = vld [vmem:[%s4646_s1 + $0x9a0] sm:$0xff]  ;;  %v1972_v39 = vld [vmem:[%s4646_s1 + $0x9a8] sm:$0xff]  ;;  %v2742_v44 = vpack.c.bf16 %v1922_v26, %v1921_v23  ;;  %v2774_v45 = vpack.c.bf16 %v1954_v32, %v1953_v31  ;;  %v2744_v47 = vpack.c.bf16 %v1940_v37, %v1939_v36  ;;  %s3025_s8 = smov 32   ;;  %s3026_s9 = smov 64  }
  0x86   :  { %849 = vmatmul.mubr.f32.vlgmr.msra.gmra.mrb[6].mxu1 %v3522_v30  ;;  %2739 = vmatpush3.bf16.msra.mxu0 %v2738_v22  ;;  %v1923_v29 = vld [vmem:[%s4646_s1 + $0x820] sm:$0xff]  ;;  %v1924_v48 = vld [vmem:[%s4646_s1 + $0x828] sm:$0xff]  ;;  %v2776_v30 = vpack.c.bf16 %v1972_v39, %v1971_v38  ;;  %v1941_v53 = vld [vmem:[%s4646_s1 + $0x8b0] sm:$0xff]  ;;  %vm1291_vm0 = vcmask 261120   ;;  %vm1293_vm1 = vcmask 523264   ;;  %vm1433_vm2 = vcmask 785408  }
  0x87   :  { %2771 = vmatpush3.bf16.msra.mxu1 %v2770_v24  ;;  %2741 = vmatprep.subr.bf16.mxu0 %v2740_v25  ;;  %v1955_v50 = vld [vmem:[%s4646_s1 + $0x920] sm:$0xff]  ;;  %v1956_v51 = vld [vmem:[%s4646_s1 + $0x928] sm:$0xff]  ;;  %v1942_v54 = vld [vmem:[%s4646_s1 + $0x8b8] sm:$0xff]  ;;  %v2746_v59 = vpack.c.bf16 %v1924_v48, %v1923_v29 }
  0x88   :  { %2773 = vmatprep.subr.bf16.mxu1 %v2772_v33  ;;  %1055 = vmatprep.mubr.f32.mxu0 %v3253_v27  ;;  %v1973_v56 = vld [vmem:[%s4646_s1 + $0x9b0] sm:$0xff]  ;;  %v1974_v57 = vld [vmem:[%s4646_s1 + $0x9b8] sm:$0xff]  ;;  %v2778_v60 = vpack.c.bf16 %v1956_v51, %v1955_v50  ;;  %v2748_v61 = vpack.c.bf16 %v1942_v54, %v1941_v53  ;;  %v1943_v0 = vld [vmem:[%s4646_s1 + $0x8c0] sm:$0xff] }
  0x89   :  { %1125 = vmatprep.mubr.f32.mxu1 %v3256_v28  ;;  %v1925_v27 = vld [vmem:[%s4646_s1 + $0x830] sm:$0xff]  ;;  %v1926_v62 = vld [vmem:[%s4646_s1 + $0x838] sm:$0xff]  ;;  %v2780_v28 = vpack.c.bf16 %v1974_v57, %v1973_v56  ;;  %v1944_v1 = vld [vmem:[%s4646_s1 + $0x8c8] sm:$0xff] }
  0x8a   :  { %2743 = vmatpush3.bf16.msra.mxu0 %v2742_v44  ;;  %v1957_v40 = vld [vmem:[%s4646_s1 + $0x930] sm:$0xff]  ;;  %v1958_v41 = vld [vmem:[%s4646_s1 + $0x938] sm:$0xff]  ;;  %v1975_v42 = vld [vmem:[%s4646_s1 + $0x9c0] sm:$0xff]  ;;  %v2750_v3 = vpack.c.bf16 %v1926_v62, %v1925_v27  ;;  %v2752_v4 = vpack.c.bf16 %v1944_v1, %v1943_v0 }
  0x8b   :  { %2775 = vmatpush3.bf16.msra.mxu1 %v2774_v45  ;;  %2745 = vmatprep.subr.bf16.mxu0 %v2744_v47  ;;  %v1976_v2 = vld [vmem:[%s4646_s1 + $0x9c8] sm:$0xff]  ;;  %v2782_v43 = vpack.c.bf16 %v1958_v41, %v1957_v40  ;;  %v1927_v5 = vld [vmem:[%s4646_s1 + $0x840] sm:$0xff]  ;;  %v1945_v9 = vld [vmem:[%s4646_s1 + $0x8d0] sm:$0xff] }
  0x8c   :  { %2777 = vmatprep.subr.bf16.mxu1 %v2776_v30  ;;  %v1928_v6 = vld [vmem:[%s4646_s1 + $0x848] sm:$0xff]  ;;  %v1959_v7 = vld [vmem:[%s4646_s1 + $0x940] sm:$0xff]  ;;  %v2784_v8 = vpack.c.bf16 %v1976_v2, %v1975_v42  ;;  %v1946_v10 = vld [vmem:[%s4646_s1 + $0x8d8] sm:$0xff] }
  0x8d   :  { %v1960_v34 = vld [vmem:[%s4646_s1 + $0x948] sm:$0xff]  ;;  %v1977_v35 = vld [vmem:[%s4646_s1 + $0x9d0] sm:$0xff]  ;;  %v1978_v11 = vld [vmem:[%s4646_s1 + $0x9d8] sm:$0xff]  ;;  %v2754_v12 = vpack.c.bf16 %v1928_v6, %v1927_v5  ;;  %v2756_v14 = vpack.c.bf16 %v1946_v10, %v1945_v9 }
  0x8e   :  { %2747 = vmatpush3.bf16.msra.mxu0 %v2746_v59  ;;  %v2786_v13 = vpack.c.bf16 %v1960_v34, %v1959_v7  ;;  %v1929_v16 = vld [vmem:[%s4646_s1 + $0x850] sm:$0xff]  ;;  %v1930_v15 = vld [vmem:[%s4646_s1 + $0x858] sm:$0xff]  ;;  %v2788_v17 = vpack.c.bf16 %v1978_v11, %v1977_v35  ;;  %v1947_v20 = vld [vmem:[%s4646_s1 + $0x8e0] sm:$0xff] }
  0x8f   :  { %2779 = vmatpush3.bf16.msra.mxu1 %v2778_v60  ;;  %2749 = vmatprep.subr.bf16.mxu0 %v2748_v61  ;;  %v1961_v18 = vld [vmem:[%s4646_s1 + $0x950] sm:$0xff]  ;;  %v1962_v19 = vld [vmem:[%s4646_s1 + $0x958] sm:$0xff]  ;;  %v1948_v21 = vld [vmem:[%s4646_s1 + $0x8e8] sm:$0xff]  ;;  %v2758_v24 = vpack.c.bf16 %v1930_v15, %v1929_v16 }
  0x90   :  { %2781 = vmatprep.subr.bf16.mxu1 %v2780_v28  ;;  %v1979_v22 = vld [vmem:[%s4646_s1 + $0x9e0] sm:$0xff]  ;;  %v1980_v23 = vld [vmem:[%s4646_s1 + $0x9e8] sm:$0xff]  ;;  %v2790_v25 = vpack.c.bf16 %v1962_v19, %v1961_v18  ;;  %v2760_v26 = vpack.c.bf16 %v1948_v21, %v1947_v20  ;;  %v1949_v38 = vld [vmem:[%s4646_s1 + $0x8f0] sm:$0xff] }
  0x91   :  { %v1931_v31 = vld [vmem:[%s4646_s1 + $0x860] sm:$0xff]  ;;  %v1932_v32 = vld [vmem:[%s4646_s1 + $0x868] sm:$0xff]  ;;  %v2792_v36 = vpack.c.bf16 %v1980_v23, %v1979_v22  ;;  %v1950_v39 = vld [vmem:[%s4646_s1 + $0x8f8] sm:$0xff] }
  0x92   :  { %2751 = vmatpush3.bf16.msra.mxu0 %v2750_v3  ;;  %v1963_v33 = vld [vmem:[%s4646_s1 + $0x960] sm:$0xff]  ;;  %v1964_v37 = vld [vmem:[%s4646_s1 + $0x968] sm:$0xff]  ;;  %v1981_v44 = vld [vmem:[%s4646_s1 + $0x9f0] sm:$0xff]  ;;  %v2762_v47 = vpack.c.bf16 %v1932_v32, %v1931_v31  ;;  %v2764_v48 = vpack.c.bf16 %v1950_v39, %v1949_v38 }
  0x93   :  { %2783 = vmatpush3.bf16.msra.mxu1 %v2782_v43  ;;  %2753 = vmatprep.subr.bf16.mxu0 %v2752_v4  ;;  %v1982_v45 = vld [vmem:[%s4646_s1 + $0x9f8] sm:$0xff]  ;;  %v2794_v29 = vpack.c.bf16 %v1964_v37, %v1963_v33  ;;  %v1933_v50 = vld [vmem:[%s4646_s1 + $0x870] sm:$0xff]  ;;  %v1999_v56 = vld [vmem:[%s4646_s1 + $0xa80] sm:$0xff] }
  0x94   :  { %2785 = vmatprep.subr.bf16.mxu1 %v2784_v8  ;;  %v1934_v30 = vld [vmem:[%s4646_s1 + $0x878] sm:$0xff]  ;;  %v1965_v51 = vld [vmem:[%s4646_s1 + $0x970] sm:$0xff]  ;;  %v2796_v53 = vpack.c.bf16 %v1982_v45, %v1981_v44  ;;  %v2000_v57 = vld [vmem:[%s4646_s1 + $0xa88] sm:$0xff] }
  0x95   :  { %v1966_v54 = vld [vmem:[%s4646_s1 + $0x978] sm:$0xff]  ;;  %v2031_v59 = vld [vmem:[%s4646_s1 + $0xb80] sm:$0xff]  ;;  %v2032_v60 = vld [vmem:[%s4646_s1 + $0xb88] sm:$0xff]  ;;  %v2766_v61 = vpack.c.bf16 %v1934_v30, %v1933_v50  ;;  %v2800_v62 = vpack.c.bf16 %v2000_v57, %v1999_v56 }
  0x96   :  { %2755 = vmatpush3.bf16.msra.mxu0 %v2754_v12  ;;  %v2798_v27 = vpack.c.bf16 %v1966_v54, %v1965_v51  ;;  %v1983_v40 = vld [vmem:[%s4646_s1 + $0xa00] sm:$0xff]  ;;  %v1984_v28 = vld [vmem:[%s4646_s1 + $0xa08] sm:$0xff]  ;;  %v2832_v0 = vpack.c.bf16 %v2032_v60, %v2031_v59  ;;  %v2001_v42 = vld [vmem:[%s4646_s1 + $0xa90] sm:$0xff] }
  0x97   :  { %2787 = vmatpush3.bf16.msra.mxu1 %v2786_v13  ;;  %2757 = vmatprep.subr.bf16.mxu0 %v2756_v14  ;;  %v2015_v41 = vld [vmem:[%s4646_s1 + $0xb00] sm:$0xff]  ;;  %v2016_v1 = vld [vmem:[%s4646_s1 + $0xb08] sm:$0xff]  ;;  %v2002_v2 = vld [vmem:[%s4646_s1 + $0xa98] sm:$0xff]  ;;  %v2802_v8 = vpack.c.bf16 %v1984_v28, %v1983_v40 }
  0x98   :  { %2789 = vmatprep.subr.bf16.mxu1 %v2788_v17  ;;  %v2996_v3 = vld [vmem:[%s4645_s0] sm:$0xff]  ;;  %v2033_v4 = vld [vmem:[%s4646_s1 + $0xb90] sm:$0xff]  ;;  %v2034_v5 = vld [vmem:[%s4646_s1 + $0xb98] sm:$0xff]  ;;  %v2834_v34 = vpack.c.bf16 %v2016_v1, %v2015_v41 }
  0x99   :  { %v854_v43 = vmul.f32 %v2996_v3, %v3312_v52  ;;  %v2997_v6 = vld [vmem:[%s4645_s0 + $0x10] sm:$0xff]  ;;  %v2804_v52 = vpack.c.bf16 %v2002_v2, %v2001_v42  ;;  %v1986_v10 = vld [vmem:[%s4646_s1 + $0xa18] sm:$0xff]  ;;  %v2003_v12 = vld [vmem:[%s4646_s1 + $0xaa0] sm:$0xff] }
  0x9a   :  { %2759 = vmatpush3.bf16.msra.mxu0 %v2758_v24  ;;  %v856_v7 = vmul.f32 %v2997_v6, %v3322_v55  ;;  %v1985_v9 = vld [vmem:[%s4646_s1 + $0xa10] sm:$0xff]  ;;  %v2836_v55 = vpack.c.bf16 %v2034_v5, %v2033_v4  ;;  %v2018_v11 = vld [vmem:[%s4646_s1 + $0xb18] sm:$0xff]  ;;  %v2004_v13 = vld [vmem:[%s4646_s1 + $0xaa8] sm:$0xff] }
  0x9b   :  { %2791 = vmatpush3.bf16.msra.mxu1 %v2790_v25  ;;  %2761 = vmatprep.subr.bf16.mxu0 %v2760_v26  ;;  %v2017_v35 = vld [vmem:[%s4646_s1 + $0xb10] sm:$0xff]  ;;  %v2035_v14 = vld [vmem:[%s4646_s1 + $0xba0] sm:$0xff]  ;;  %v2036_v16 = vld [vmem:[%s4646_s1 + $0xba8] sm:$0xff]  ;;  %v2806_v15 = vpack.c.bf16 %v1986_v10, %v1985_v9  ;;  %v2808_v17 = vpack.c.bf16 %v2004_v13, %v2003_v12 }
  0x9c   :  { %2793 = vmatprep.subr.bf16.mxu1 %v2792_v36  ;;  %v2838_v18 = vpack.c.bf16 %v2018_v11, %v2017_v35  ;;  %v1987_v19 = vld [vmem:[%s4646_s1 + $0xa20] sm:$0xff]  ;;  %v1988_v20 = vld [vmem:[%s4646_s1 + $0xa28] sm:$0xff]  ;;  %v2840_v22 = vpack.c.bf16 %v2036_v16, %v2035_v14  ;;  %v2005_v24 = vld [vmem:[%s4646_s1 + $0xab0] sm:$0xff] }
  0x9d   :  { %v2019_v21 = vld [vmem:[%s4646_s1 + $0xb20] sm:$0xff]  ;;  %v2020_v23 = vld [vmem:[%s4646_s1 + $0xb28] sm:$0xff]  ;;  %v2006_v25 = vld [vmem:[%s4646_s1 + $0xab8] sm:$0xff]  ;;  %v2810_v32 = vpack.c.bf16 %v1988_v20, %v1987_v19 }
  0x9e   :  { %2763 = vmatpush3.bf16.msra.mxu0 %v2762_v47  ;;  %v2037_v26 = vld [vmem:[%s4646_s1 + $0xbb0] sm:$0xff]  ;;  %v2038_v31 = vld [vmem:[%s4646_s1 + $0xbb8] sm:$0xff]  ;;  %v2842_v33 = vpack.c.bf16 %v2020_v23, %v2019_v21  ;;  %v2812_v36 = vpack.c.bf16 %v2006_v25, %v2005_v24  ;;  %v2007_v44 = vld [vmem:[%s4646_s1 + $0xac0] sm:$0xff] }
  0x9f   :  { %2795 = vmatpush3.bf16.msra.mxu1 %v2794_v29  ;;  %2765 = vmatprep.subr.bf16.mxu0 %v2764_v48  ;;  %v1990_v37 = vld [vmem:[%s4646_s1 + $0xa38] sm:$0xff]  ;;  %v2021_v38 = vld [vmem:[%s4646_s1 + $0xb30] sm:$0xff]  ;;  %v2008_v45 = vld [vmem:[%s4646_s1 + $0xac8] sm:$0xff] }
  0xa0   :  { %2797 = vmatprep.subr.bf16.mxu1 %v2796_v53  ;;  %v2022_v39 = vld [vmem:[%s4646_s1 + $0xb38] sm:$0xff]  ;;  %v2039_v47 = vld [vmem:[%s4646_s1 + $0xbc0] sm:$0xff]  ;;  %v2040_v29 = vld [vmem:[%s4646_s1 + $0xbc8] sm:$0xff]  ;;  %v2816_v30 = vpack.c.bf16 %v2008_v45, %v2007_v44 }
  0xa1   :  { %v2846_v50 = vpack.c.bf16 %v2022_v39, %v2021_v38  ;;  %v1991_v51 = vld [vmem:[%s4646_s1 + $0xa40] sm:$0xff]  ;;  %v1992_v53 = vld [vmem:[%s4646_s1 + $0xa48] sm:$0xff]  ;;  %v2848_v56 = vpack.c.bf16 %v2040_v29, %v2039_v47  ;;  %v2009_v59 = vld [vmem:[%s4646_s1 + $0xad0] sm:$0xff] }
  0xa2   :  { %2767 = vmatpush3.bf16.msra.mxu0 %v2766_v61  ;;  %v2023_v54 = vld [vmem:[%s4646_s1 + $0xb40] sm:$0xff]  ;;  %v2024_v57 = vld [vmem:[%s4646_s1 + $0xb48] sm:$0xff]  ;;  %v2010_v60 = vld [vmem:[%s4646_s1 + $0xad8] sm:$0xff] }
  0xa3   :  { %2799 = vmatpush3.bf16.msra.mxu1 %v2798_v27  ;;  %2801 = vmatprep.subr.bf16.mxu0 %v2800_v62  ;;  %v2041_v61 = vld [vmem:[%s4646_s1 + $0xbd0] sm:$0xff]  ;;  %v2042_v27 = vld [vmem:[%s4646_s1 + $0xbd8] sm:$0xff]  ;;  %v2818_v62 = vpack.c.bf16 %v1992_v53, %v1991_v51  ;;  %v2850_v40 = vpack.c.bf16 %v2024_v57, %v2023_v54  ;;  %v2820_v28 = vpack.c.bf16 %v2010_v60, %v2009_v59  ;;  %v2011_v3 = vld [vmem:[%s4646_s1 + $0xae0] sm:$0xff] }
  0xa4   :  { %2833 = vmatprep.subr.bf16.mxu1 %v2832_v0  ;;  %v1993_v41 = vld [vmem:[%s4646_s1 + $0xa50] sm:$0xff]  ;;  %v1994_v0 = vld [vmem:[%s4646_s1 + $0xa58] sm:$0xff]  ;;  %v2852_v42 = vpack.c.bf16 %v2042_v27, %v2041_v61  ;;  %v2043_v4 = vld [vmem:[%s4646_s1 + $0xbe0] sm:$0xff] }
  0xa5   :  { %1056 = vmatmul.mubr.f32.vlgmr.msra.gmra.mrb[8].mxu0 %v854_v43  ;;  %v2025_v1 = vld [vmem:[%s4646_s1 + $0xb50] sm:$0xff]  ;;  %v2026_v2 = vld [vmem:[%s4646_s1 + $0xb58] sm:$0xff]  ;;  %v2012_v43 = vld [vmem:[%s4646_s1 + $0xae8] sm:$0xff]  ;;  %v2822_v6 = vpack.c.bf16 %v1994_v0, %v1993_v41 }
  0xa6   :  { %1126 = vmatmul.mubr.f32.vlgmr.msra.gmra.mrb[8].mxu1 %v856_v7  ;;  %2803 = vmatpush3.bf16.msra.mxu0 %v2802_v8  ;;  %v2044_v5 = vld [vmem:[%s4646_s1 + $0xbe8] sm:$0xff]  ;;  %v2854_v7 = vpack.c.bf16 %v2026_v2, %v2025_v1  ;;  %v2824_v8 = vpack.c.bf16 %v2012_v43, %v2011_v3  ;;  %v2027_v9 = vld [vmem:[%s4646_s1 + $0xb60] sm:$0xff]  ;;  %v2014_v11 = vld [vmem:[%s4646_s1 + $0xaf8] sm:$0xff] }
  0xa7   :  { %2835 = vmatpush3.bf16.msra.mxu1 %v2834_v34  ;;  %2805 = vmatprep.subr.bf16.mxu0 %v2804_v52  ;;  %v1995_v34 = vld [vmem:[%s4646_s1 + $0xa60] sm:$0xff]  ;;  %v1996_v52 = vld [vmem:[%s4646_s1 + $0xa68] sm:$0xff]  ;;  %v2856_v10 = vpack.c.bf16 %v2044_v5, %v2043_v4  ;;  %v2045_v12 = vld [vmem:[%s4646_s1 + $0xbf0] sm:$0xff] }
  0xa8   :  { %2837 = vmatprep.subr.bf16.mxu1 %v2836_v55  ;;  %1195 = vmatprep.mubr.f32.mxu0 %v3567_v58  ;;  %v1989_v58 = vld [vmem:[%s4646_s1 + $0xa30] sm:$0xff]  ;;  %v2028_v35 = vld [vmem:[%s4646_s1 + $0xb68] sm:$0xff]  ;;  %v2046_v13 = vld [vmem:[%s4646_s1 + $0xbf8] sm:$0xff]  ;;  %v2826_v14 = vpack.c.bf16 %v1996_v52, %v1995_v34 }
  0xa9   :  { %1265 = vmatprep.mubr.f32.mxu1 %v3580_v63  ;;  %v2844_v63 = vpack.c.bf16 %v2038_v31, %v2037_v26  ;;  %v2814_v48 = vpack.c.bf16 %v1990_v37, %v1989_v58  ;;  %v2013_v55 = vld [vmem:[%s4646_s1 + $0xaf0] sm:$0xff]  ;;  %v2858_v16 = vpack.c.bf16 %v2028_v35, %v2027_v9  ;;  %v2860_v19 = vpack.c.bf16 %v2046_v13, %v2045_v12  ;;  %v2030_v21 = vld [vmem:[%s4646_s1 + $0xb78] sm:$0xff]  ;;  %v2998_v24 = vld [vmem:[%s4645_s0 + $0x20] sm:$0xff] }
  0xaa   :  { %2807 = vmatpush3.bf16.msra.mxu0 %v2806_v15  ;;  %v2828_v15 = vpack.c.bf16 %v2014_v11, %v2013_v55  ;;  %v2029_v20 = vld [vmem:[%s4646_s1 + $0xb70] sm:$0xff]  ;;  %v858_v25 = vmul.f32 %v2998_v24, %v3544_v46  ;;  %v1298_v51 = vld [vmem:[%s4648_s3 + $0x18] sm:$0xff]  ;;  %v1303_v57 = vld [vmem:[%s4648_s3 + $0x40] sm:$0xff] }
  0xab   :  { %2839 = vmatpush3.bf16.msra.mxu1 %v2838_v18  ;;  %2809 = vmatprep.subr.bf16.mxu0 %v2808_v17  ;;  %v1997_v18 = vld [vmem:[%s4646_s1 + $0xa70] sm:$0xff]  ;;  %v1998_v17 = vld [vmem:[%s4646_s1 + $0xa78] sm:$0xff]  ;;  %v2862_v23 = vpack.c.bf16 %v2030_v21, %v2029_v20  ;;  %v1311_v2 = vld [vmem:[%s4648_s3 + $0x80] sm:$0xff] }
  0xac   :  { %2841 = vmatprep.subr.bf16.mxu1 %v2840_v22  ;;  %v2830_v22 = vpack.c.bf16 %v1998_v17, %v1997_v18  ;;  %v2999_v26 = vld [vmem:[%s4645_s0 + $0x30] sm:$0xff]  ;;  %v1306_v54 = vld [vmem:[%s4648_s3 + $0x58] sm:$0xff]  ;;  %v1319_v3 = vld [vmem:[%s4648_s3 + $0xc0] sm:$0xff] }
  0xad   :  { %v860_v31 = vmul.f32 %v2999_v26, %v3554_v49  ;;  %v1296_v49 = vld [vmem:[%s4648_s3 + $0x8] sm:$0xff]  ;;  %v2888_v59 = vpack.c.bf16 %v1306_v54, %v1298_v51  ;;  %v1297_v61 = vld [vmem:[%s4648_s3 + $0x10] sm:$0xff]  ;;  %v1314_v41 = vld [vmem:[%s4648_s3 + $0x98] sm:$0xff]  ;;  %v2870_v4 = vpack.c.bf16 %v1319_v3, %v1311_v2 }
  0xae   :  { %2811 = vmatpush3.bf16.msra.mxu0 %v2810_v32  ;;  %v1305_v27 = vld [vmem:[%s4648_s3 + $0x50] sm:$0xff]  ;;  %v1322_v0 = vld [vmem:[%s4648_s3 + $0xd8] sm:$0xff]  ;;  %v1335_v55 = vld [vmem:[%s4648_s3 + $0x140] sm:$0xff] }
  0xaf   :  { %2843 = vmatpush3.bf16.msra.mxu1 %v2842_v33  ;;  %2813 = vmatprep.subr.bf16.mxu0 %v2812_v36  ;;  %v1313_v43 = vld [vmem:[%s4648_s3 + $0x90] sm:$0xff]  ;;  %v1330_v52 = vld [vmem:[%s4648_s3 + $0x118] sm:$0xff]  ;;  %v1343_v20 = vld [vmem:[%s4648_s3 + $0x180] sm:$0xff] }
  0xb0   :  { %2845 = vmatprep.subr.bf16.mxu1 %v2844_v63  ;;  %v1321_v5 = vld [vmem:[%s4648_s3 + $0xd0] sm:$0xff]  ;;  %v1338_v9 = vld [vmem:[%s4648_s3 + $0x158] sm:$0xff]  ;;  %v1351_v21 = vld [vmem:[%s4648_s3 + $0x1c0] sm:$0xff] }
  0xb1   :  { %v2896_v35 = vpack.c.bf16 %v1338_v9, %v1330_v52  ;;  %v1329_v11 = vld [vmem:[%s4648_s3 + $0x110] sm:$0xff]  ;;  %v1368_v26 = vld [vmem:[%s4648_s3 + $0x248] sm:$0xff]  ;;  %v1386_v9 = vld [vmem:[%s4648_s3 + $0x2d8] sm:$0xff] }
  0xb2   :  { %2815 = vmatpush3.bf16.msra.mxu0 %v2814_v48  ;;  %v1337_v12 = vld [vmem:[%s4648_s3 + $0x150] sm:$0xff] }
  0xb3   :  { %2847 = vmatpush3.bf16.msra.mxu1 %v2846_v50  ;;  %2817 = vmatprep.subr.bf16.mxu0 %v2816_v30  ;;  %v1304_v30 = vld [vmem:[%s4648_s3 + $0x48] sm:$0xff]  ;;  %v2898_v18 = vpack.c.bf16 %v1337_v12, %v1329_v11  ;;  %v1353_v24 = vld [vmem:[%s4648_s3 + $0x1d0] sm:$0xff] }
  0xb4   :  { %2849 = vmatprep.subr.bf16.mxu1 %v2848_v56  ;;  %v2864_v53 = vpack.c.bf16 %v1304_v30, %v1296_v49  ;;  %v1295_v56 = vld [vmem:[%s4648_s3] sm:$0xff] }
  0xb5   :  { %v2866_v60 = vpack.c.bf16 %v1303_v57, %v1295_v56 }
  0xb6   :  { %2819 = vmatpush3.bf16.msra.mxu0 %v2818_v62  ;;  %v1312_v62 = vld [vmem:[%s4648_s3 + $0x88] sm:$0xff] }
  0xb7   :  { %2851 = vmatpush3.bf16.msra.mxu1 %v2850_v40  ;;  %2821 = vmatprep.subr.bf16.mxu0 %v2820_v28  ;;  %v2890_v40 = vpack.c.bf16 %v1305_v27, %v1297_v61  ;;  %v1320_v28 = vld [vmem:[%s4648_s3 + $0xc8] sm:$0xff] }
  0xb8   :  { %2853 = vmatprep.subr.bf16.mxu1 %v2852_v42  ;;  %v2868_v1 = vpack.c.bf16 %v1320_v28, %v1312_v62  ;;  %v2892_v42 = vpack.c.bf16 %v1322_v0, %v1314_v41 }
  0xba   :  { %2823 = vmatpush3.bf16.msra.mxu0 %v2822_v6  ;;  %v1328_v6 = vld [vmem:[%s4648_s3 + $0x108] sm:$0xff] }
  0xbb   :  { %2855 = vmatpush3.bf16.msra.mxu1 %v2854_v7  ;;  %2825 = vmatprep.subr.bf16.mxu0 %v2824_v8  ;;  %v1336_v7 = vld [vmem:[%s4648_s3 + $0x148] sm:$0xff]  ;;  %v2894_v8 = vpack.c.bf16 %v1321_v5, %v1313_v43 }
  0xbc   :  { %2857 = vmatprep.subr.bf16.mxu1 %v2856_v10  ;;  %v2872_v34 = vpack.c.bf16 %v1336_v7, %v1328_v6  ;;  %v1327_v10 = vld [vmem:[%s4648_s3 + $0x100] sm:$0xff]  ;;  %v1376_v5 = vld [vmem:[%s4648_s3 + $0x288] sm:$0xff]  ;;  %v1378_v7 = vld [vmem:[%s4648_s3 + $0x298] sm:$0xff] }
  0xbd   :  { %v2874_v13 = vpack.c.bf16 %v1335_v55, %v1327_v10  ;;  %v1384_v6 = vld [vmem:[%s4648_s3 + $0x2c8] sm:$0xff]  ;;  %v1375_v10 = vld [vmem:[%s4648_s3 + $0x280] sm:$0xff]  ;;  %v2908_v11 = vpack.c.bf16 %v1386_v9, %v1378_v7 }
  0xbe   :  { %2827 = vmatpush3.bf16.msra.mxu0 %v2826_v14  ;;  %v1344_v14 = vld [vmem:[%s4648_s3 + $0x188] sm:$0xff]  ;;  %v2884_v52 = vpack.c.bf16 %v1384_v6, %v1376_v5  ;;  %v1350_v5 = vld [vmem:[%s4648_s3 + $0x1b8] sm:$0xff] }
  0xbf   :  { %2859 = vmatpush3.bf16.msra.mxu1 %v2858_v16  ;;  %2829 = vmatprep.subr.bf16.mxu0 %v2828_v15  ;;  %v1352_v16 = vld [vmem:[%s4648_s3 + $0x1c8] sm:$0xff]  ;;  %v1346_v15 = vld [vmem:[%s4648_s3 + $0x198] sm:$0xff] }
  0xc0   :  { %2861 = vmatprep.subr.bf16.mxu1 %v2860_v19  ;;  %v2876_v17 = vpack.c.bf16 %v1352_v16, %v1344_v14  ;;  %v1354_v19 = vld [vmem:[%s4648_s3 + $0x1d8] sm:$0xff]  ;;  %v1385_v14 = vld [vmem:[%s4648_s3 + $0x2d0] sm:$0xff] }
  0xc1   :  { %v1358_v6 = vld [vmem:[%s4648_s3 + $0x1f8] sm:$0xff] }
  0xc2   :  { %2831 = vmatpush3.bf16.msra.mxu0 %v2830_v22  ;;  %v2900_v22 = vpack.c.bf16 %v1354_v19, %v1346_v15  ;;  %v1302_v19 = vld [vmem:[%s4648_s3 + $0x38] sm:$0xff] }
  0xc3   :  { %2863 = vmatpush3.bf16.msra.mxu1 %v2862_v23  ;;  %2865 = vmatprep.subr.bf16.mxu0 %v2864_v53  ;;  %v1345_v23 = vld [vmem:[%s4648_s3 + $0x190] sm:$0xff] }
  0xc4   :  { %2889 = vmatprep.subr.bf16.mxu1 %v2888_v59 }
  0xc5   :  { %1196 = vmatmul.mubr.f32.vlgmr.msra.gmra.mrb[10].mxu0 %v858_v25  ;;  %v1360_v25 = vld [vmem:[%s4648_s3 + $0x208] sm:$0xff] }
  0xc6   :  { %1266 = vmatmul.mubr.f32.vlgmr.msra.gmra.mrb[10].mxu1 %v860_v31  ;;  %2867 = vmatpush1.bf16.msra.mxu0 %v2866_v60  ;;  %v1362_v31 = vld [vmem:[%s4648_s3 + $0x218] sm:$0xff] }
  0xc7   :  { %2891 = vmatpush1.bf16.msra.mxu1 %v2890_v40  ;;  %2869 = vmatprep.subr.bf16.mxu0 %v2868_v1 }
  0xc8   :  { %2893 = vmatprep.subr.bf16.mxu1 %v2892_v42 }
  0xca   :  { %2871 = vmatpush1.bf16.msra.mxu0 %v2870_v4 }
  0xcb   :  { %2895 = vmatpush1.bf16.msra.mxu1 %v2894_v8  ;;  %2873 = vmatprep.subr.bf16.mxu0 %v2872_v34 }
  0xcc   :  { %2897 = vmatprep.subr.bf16.mxu1 %v2896_v35  ;;  %v1383_v35 = vld [vmem:[%s4648_s3 + $0x2c0] sm:$0xff] }
  0xcd   :  { %v2886_v12 = vpack.c.bf16 %v1383_v35, %v1375_v10  ;;  %v2948_v10 = vpack.c.bf16 %v1358_v6, %v1350_v5  ;;  %v1349_v35 = vld [vmem:[%s4648_s3 + $0x1b0] sm:$0xff] }
  0xce   :  { %2875 = vmatpush1.bf16.msra.mxu0 %v2874_v13  ;;  %v1377_v13 = vld [vmem:[%s4648_s3 + $0x290] sm:$0xff] }
  0xcf   :  { %2899 = vmatpush1.bf16.msra.mxu1 %v2898_v18  ;;  %2877 = vmatprep.subr.bf16.mxu0 %v2876_v17  ;;  %v2910_v15 = vpack.c.bf16 %v1385_v14, %v1377_v13  ;;  %v1300_v18 = vld [vmem:[%s4648_s3 + $0x28] sm:$0xff]  ;;  %v1366_v13 = vld [vmem:[%s4648_s3 + $0x238] sm:$0xff] }
  0xd0   :  { %2901 = vmatprep.subr.bf16.mxu1 %v2900_v22  ;;  %v1308_v17 = vld [vmem:[%s4648_s3 + $0x68] sm:$0xff]  ;;  %v1310_v22 = vld [vmem:[%s4648_s3 + $0x78] sm:$0xff] }
  0xd1   :  { %v1374_v14 = vld [vmem:[%s4648_s3 + $0x278] sm:$0xff] }
  0xf8   :  { %v2092_v32 = vpop.f32.mrb[0].mxu0 }
  0xf9   :  { %v2127_v33 = vpop.f32.mrb[0].mxu1  ;;  %v2093_v36 = vpop.f32.mrb[1].mxu0 }
  0xfa   :  { %v2094_v58 = vadd.f32 %v2093_v36, %v2092_v32  ;;  %v2128_v37 = vpop.f32.mrb[1].mxu1  ;;  %v1370_v32 = vld [vmem:[%s4648_s3 + $0x258] sm:$0xff]  ;;  %v2878_v36 = vpack.c.bf16 %v1351_v21, %v1343_v20  ;;  %v2912_v21 = vpack.c.bf16 %v1308_v17, %v1300_v18  ;;  %v1363_v18 = vld [vmem:[%s4648_s3 + $0x220] sm:$0xff] }
  0xfb   :  { %v2129_v38 = vadd.f32 %v2128_v37, %v2127_v33  ;;  %v1371_v17 = vld [vmem:[%s4648_s3 + $0x260] sm:$0xff] }
  0xfc   :  { %2879 = vmatpush1.bf16.msra.mxu0 %v2878_v36 }
  0xfd   :  { %v431_v63 = vadd.f32 %v2129_v38, %v2094_v58  ;;  %v2902_v38 = vpack.c.bf16 %v1353_v24, %v1345_v23  ;;  %v2047_v23 = vld [vmem:[%s4647_s2] ss:$0 sm:$0xff]  ;;  %v2936_v24 = vpack.c.bf16 %v1310_v22, %v1302_v19  ;;  %v1373_v22 = vld [vmem:[%s4648_s3 + $0x270] sm:$0xff] }
  0xff   :  { %2903 = vmatpush1.bf16.msra.mxu1 %v2902_v38 }
 0x118   :  { %v2162_v39 = vpop.f32.mrb[2].mxu0 }
 0x119   :  { %v2163_v44 = vpop.f32.mrb[3].mxu0  ;;  %v2197_v46 = vpop.f32.mrb[2].mxu1 }
 0x11a   :  { %v2164_v45 = vadd.f32 %v2163_v44, %v2162_v39  ;;  %v2198_v47 = vpop.f32.mrb[3].mxu1  ;;  %v1359_v39 = vld [vmem:[%s4648_s3 + $0x200] sm:$0xff] }
 0x11b   :  { %v2199_v29 = vadd.f32 %v2198_v47, %v2197_v46  ;;  %v1367_v44 = vld [vmem:[%s4648_s3 + $0x240] sm:$0xff]  ;;  %v2904_v47 = vpack.c.bf16 %v1370_v32, %v1362_v31 }
 0x11c   :  { %v501_v48 = vadd.f32 %v2164_v45, %v431_v63  ;;  %v2880_v63 = vpack.c.bf16 %v1368_v26, %v1360_v25  ;;  %v2882_v51 = vpack.c.bf16 %v1367_v44, %v1359_v39  ;;  %v3024_v26 = vmov 0.0   ;;  %v1309_v39 = vld [vmem:[%s4648_s3 + $0x70] sm:$0xff]  ;;  %v1316_v44 = vld [vmem:[%s4648_s3 + $0xa8] sm:$0xff] }
 0x11d   :  { %2905 = vmatprep.subr.bf16.mxu1 %v2904_v47  ;;  %1501 = vmatprep.mubr.f32.mxu0 %v3024_v26  ;;  %v1326_v47 = vld [vmem:[%s4648_s3 + $0xf8] sm:$0xff] }
 0x11e   :  { %v4326_v50 = vadd.f32 %v2199_v29, %v501_v48  ;;  %v1361_v29 = vld [vmem:[%s4648_s3 + $0x210] sm:$0xff]  ;;  %2881 = vmatprep.subr.bf16.mxu0 %v2880_v63  ;;  %1572 = vmatprep.mubr.f32.mxu1 %v3024_v26 }
 0x11f   :  { %v1369_v48 = vld [vmem:[%s4648_s3 + $0x250] sm:$0xff]  ;;  %2883 = vmatpush1.bf16.msra.mxu0 %v2882_v51 }
 0x120   :  { %v2906_v53 = vpack.c.bf16 %v1369_v48, %v1361_v29  ;;  %2885 = vmatprep.subr.bf16.mxu0 %v2884_v52  ;;  %v1301_v63 = vld [vmem:[%s4648_s3 + $0x30] sm:$0xff]  ;;  %v1355_v52 = vld [vmem:[%s4648_s3 + $0x1e0] sm:$0xff] }
 0x121   :  { %v2938_v48 = vpack.c.bf16 %v1309_v39, %v1301_v63  ;;  %v1389_v63 = vld [vmem:[%s4648_s3 + $0x2f0] sm:$0xff] }
 0x122   :  { %2907 = vmatpush1.bf16.msra.mxu1 %v2906_v53 }
 0x123   :  { %2909 = vmatprep.subr.bf16.mxu1 %v2908_v11  ;;  %2887 = vmatpush1.bf16.msra.mxu0 %v2886_v12  ;;  %v1364_v11 = vld [vmem:[%s4648_s3 + $0x228] sm:$0xff] }
 0x124   :  { %2913 = vmatprep.subr.bf16.mxu0 %v2912_v21  ;;  %v1372_v12 = vld [vmem:[%s4648_s3 + $0x268] sm:$0xff]  ;;  %v1365_v21 = vld [vmem:[%s4648_s3 + $0x230] sm:$0xff] }
 0x125   :  { %v2928_v19 = vpack.c.bf16 %v1372_v12, %v1364_v11 }
 0x126   :  { %2911 = vmatpush1.bf16.msra.mxu1 %v2910_v15 }
 0x127   :  { %2937 = vmatprep.subr.bf16.mxu1 %v2936_v24  ;;  %v1388_v24 = vld [vmem:[%s4648_s3 + $0x2e8] sm:$0xff] }
 0x138   :  { %v2232_v33 = vpop.f32.mrb[4].mxu0 }
 0x139   :  { %v2233_v58 = vpop.f32.mrb[5].mxu0  ;;  %v2267_v37 = vpop.f32.mrb[4].mxu1 }
 0x13a   :  { %v2234_v46 = vadd.f32 %v2233_v58, %v2232_v33  ;;  %v2268_v45 = vpop.f32.mrb[5].mxu1  ;;  %v1299_v58 = vld [vmem:[%s4648_s3 + $0x20] sm:$0xff] }
 0x13b   :  { %v2269_v49 = vadd.f32 %v2268_v45, %v2267_v37  ;;  %v1307_v37 = vld [vmem:[%s4648_s3 + $0x60] sm:$0xff]  ;;  %v1318_v45 = vld [vmem:[%s4648_s3 + $0xb8] sm:$0xff] }
 0x13c   :  { %v641_v30 = vadd.f32 %v2234_v46, %v4326_v50  ;;  %v1324_v46 = vld [vmem:[%s4648_s3 + $0xe8] sm:$0xff]  ;;  %v2914_v29 = vpack.c.bf16 %v1307_v37, %v1299_v58  ;;  %v1387_v37 = vld [vmem:[%s4648_s3 + $0x2e0] sm:$0xff] }
 0x13e   :  { %v711_v54 = vadd.f32 %v2269_v49, %v641_v30  ;;  %v1315_v49 = vld [vmem:[%s4648_s3 + $0xa0] sm:$0xff] }
 0x13f   :  { %v1323_v30 = vld [vmem:[%s4648_s3 + $0xe0] sm:$0xff] }
 0x158   :  { %v2302_v56 = vpop.f32.mrb[6].mxu0 }
 0x159   :  { %v2303_v57 = vpop.f32.mrb[7].mxu0  ;;  %v2337_v59 = vpop.f32.mrb[6].mxu1 }
 0x15a   :  { %v2304_v60 = vadd.f32 %v2303_v57, %v2302_v56  ;;  %v2338_v61 = vpop.f32.mrb[7].mxu1  ;;  %v2940_v56 = vpack.c.bf16 %v1326_v47, %v1318_v45  ;;  %v1317_v57 = vld [vmem:[%s4648_s3 + $0xb0] sm:$0xff] }
 0x15b   :  { %v2339_v27 = vadd.f32 %v2338_v61, %v2337_v59  ;;  %v1325_v59 = vld [vmem:[%s4648_s3 + $0xf0] sm:$0xff] }
 0x15c   :  { %v781_v62 = vadd.f32 %v2304_v60, %v711_v54  ;;  %v2916_v54 = vpack.c.bf16 %v1324_v46, %v1316_v44  ;;  %v1332_v60 = vld [vmem:[%s4648_s3 + $0x128] sm:$0xff]  ;;  %v1393_v46 = vlaneseq }
 0x15e   :  { %v851_v40 = vadd.f32 %v2339_v27, %v781_v62  ;;  %v1340_v27 = vld [vmem:[%s4648_s3 + $0x168] sm:$0xff]  ;;  %v1334_v62 = vld [vmem:[%s4648_s3 + $0x138] sm:$0xff]  ;;  %v1394_v45 = vshrl.u32 %v1393_v46, 7 }
 0x160   :  { %v1395_v47 = vsub.s32 0, %v1394_v45  ;;  %v1411_v5 = vsub.s32 4, %v1394_v45  ;;  %v1419_v6 = vsub.s32 6, %v1394_v45 }
 0x178   :  { %v2372_v28 = vpop.f32.mrb[8].mxu0 }
 0x179   :  { %v2407_v41 = vpop.f32.mrb[8].mxu1  ;;  %v2373_v50 = vpop.f32.mrb[9].mxu0 }
 0x17a   :  { %v2374_v0 = vadd.f32 %v2373_v50, %v2372_v28  ;;  %v2408_v1 = vpop.f32.mrb[9].mxu1  ;;  %v2918_v28 = vpack.c.bf16 %v1323_v30, %v1315_v49  ;;  %v1331_v50 = vld [vmem:[%s4648_s3 + $0x120] sm:$0xff]  ;;  %v1399_v49 = vsub.s32 1, %v1394_v45  ;;  %v1407_v30 = vsub.s32 3, %v1394_v45 }
 0x17b   :  { %v2409_v42 = vadd.f32 %v2408_v1, %v2407_v41  ;;  %v2942_v41 = vpack.c.bf16 %v1325_v59, %v1317_v57  ;;  %v2920_v1 = vpack.c.bf16 %v1340_v27, %v1332_v60 }
 0x17d   :  { %v1128_v2 = vadd.f32 %v2409_v42, %v2374_v0  ;;  %v1339_v0 = vld [vmem:[%s4648_s3 + $0x160] sm:$0xff] }
 0x17e   :  { %v2922_v7 = vpack.c.bf16 %v1339_v0, %v1331_v50 }
 0x198   :  { %v2442_v3 = vpop.f32.mrb[10].mxu0 }
 0x199   :  { %v2443_v43 = vpop.f32.mrb[11].mxu0  ;;  %v2477_v4 = vpop.f32.mrb[10].mxu1 }
 0x19a   :  { %v2444_v8 = vadd.f32 %v2443_v43, %v2442_v3  ;;  %v2478_v34 = vpop.f32.mrb[11].mxu1  ;;  %v1341_v3 = vld [vmem:[%s4648_s3 + $0x170] sm:$0xff]  ;;  %v1348_v43 = vld [vmem:[%s4648_s3 + $0x1a8] sm:$0xff] }
 0x19b   :  { %v2479_v55 = vadd.f32 %v2478_v34, %v2477_v4  ;;  %v1356_v4 = vld [vmem:[%s4648_s3 + $0x1e8] sm:$0xff]  ;;  %v1347_v34 = vld [vmem:[%s4648_s3 + $0x1a0] sm:$0xff] }
 0x19c   :  { %v1198_v16 = vadd.f32 %v2444_v8, %v1128_v2  ;;  %v1333_v2 = vld [vmem:[%s4648_s3 + $0x130] sm:$0xff]  ;;  %v2924_v9 = vpack.c.bf16 %v1356_v4, %v1348_v43 }
 0x19d   :  { %v2946_v8 = vpack.c.bf16 %v1341_v3, %v1333_v2 }
 0x19e   :  { %v1268_v20 = vadd.f32 %v2479_v55, %v1198_v16  ;;  %v1357_v55 = vld [vmem:[%s4648_s3 + $0x1f0] sm:$0xff]  ;;  %v2926_v16 = vpack.c.bf16 %v1355_v52, %v1347_v34  ;;  %v1415_v34 = vsub.s32 5, %v1394_v45  ;;  %v1423_v52 = vsub.s32 7, %v1394_v45 }
 0x19f   :  { %v2950_v15 = vpack.c.bf16 %v1357_v55, %v1349_v35 }
 0x1a0   :  { %v1271_v25 = vadd.f32 %v1268_v20, %v851_v40  ;;  %v1342_v40 = vld [vmem:[%s4648_s3 + $0x178] sm:$0xff]  ;;  %v2952_v20 = vpack.c.bf16 %v1374_v14, %v1366_v13 }
 0x1a1   :  { %v2944_v42 = vpack.c.bf16 %v1342_v40, %v1334_v62 }
 0x1a2   :  { %v1279_v31 = vadd.f32 %v2047_v23, %v1271_v25  ;;  %v1380_v23 = vld [vmem:[%s4648_s3 + $0x2a8] sm:$0xff]  ;;  %v1382_v25 = vld [vmem:[%s4648_s3 + $0x2b8] sm:$0xff] }
 0x1a4   :  { %v1280_v32 = vmax.f32 %v1279_v31, 0.0  ;;  %v2930_v31 = vpack.c.bf16 %v1371_v17, %v1363_v18 }
 0x1a6   :  { %v1281_v33 = vmul.f32 %v1280_v32, %v1280_v32 }
 0x1a8   :  { %1284 = vrot.lane.b32.xlu0 %v1281_v33, %s3025_s8  ;;  %v1282_v36 = vmul.f32 %v1281_v33, %v1280_v32  ;;  %v1379_v33 = vld [vmem:[%s4648_s3 + $0x2a0] sm:$0xff] }
 0x1a9   :  { %v2934_v39 = vpack.c.bf16 %v1387_v37, %v1379_v33 }
 0x1ac   :  { %1288 = vrot.lane.b32.xlu0 %v1282_v36, %s3026_s9  ;;  %v2932_v36 = vpack.c.bf16 %v1388_v24, %v1380_v23 }
 0x21a   :  { %v1285_v38 = vpop.permute.xlu0 %1284 }
 0x21b   :  { %v1292_v51 = vsel %vm1291_vm0, %v1280_v32, %v1285_v38  ;;  %v2954_v32 = vpack.c.bf16 %v1373_v22, %v1365_v21  ;;  %v1381_v38 = vld [vmem:[%s4648_s3 + $0x2b0] sm:$0xff] }
 0x21c   :  { %v2958_v44 = vpack.c.bf16 %v1389_v63, %v1381_v38 }
 0x21e   :  { %v1289_v53 = vpop.permute.xlu0 %1288 }
 0x21f   :  { %v4527_v61 = vsel %vm1293_vm1, %v1292_v51, %v1289_v53 }
 0x220   :  { %2048 = vmatmul.mubr.msk.f32.vlgmr.msra.gmra.mrb[12].mxu0 %vm1433_vm2, %v4527_v61  ;;  %2049 = vmatmul.mubr.msk.f32.vlgmr.msra.gmra.mrb[12].mxu1 %vm1433_vm2, %v4527_v61 }
 0x221   :  { %2915 = vmatpush1.bf16.msra.mxu0 %v2914_v29  ;;  %2939 = vmatpush1.bf16.msra.mxu1 %v2938_v48  ;;  %v1403_v29 = vsub.s32 2, %v1394_v45  ;;  %v1391_v48 = vld [vmem:[%s4649_s4] sm:$0xff]  ;;  %s3027_s4 = smov [#allocation2]  }
 0x222   :  { %2917 = vmatprep.subr.bf16.mxu0 %v2916_v54  ;;  %2941 = vmatprep.subr.bf16.mxu1 %v2940_v56  ;;  %v1396_v51 = vrot.slane %v1391_v48, %v1395_v47  ;;  %v1400_v54 = vrot.slane %v1391_v48, %v1399_v49  ;;  %v1408_v56 = vrot.slane %v1391_v48, %v1407_v30  ;;  %s1783_s12 = sshll.u32 %s3027_s4, 4  ;;  %s1784_s12 = int_to_ptr.vmem [resolvable:$true] %s1783_s12 }
 0x223   :  { %1643 = vmatprep.mubr.f32.mxu0 %v3024_v26  ;;  %1714 = vmatprep.mubr.f32.mxu1 %v3024_v26  ;;  %v1390_v26 = vld [vmem:[%s4648_s3 + $0x2f8] sm:$0xff]  ;;  %v1404_v53 = vrot.slane %v1391_v48, %v1403_v29  ;;  %v1420_v35 = vrot.slane %v1391_v48, %v1419_v6  ;;  %v1416_v55 = vrot.slane %v1391_v48, %v1415_v34  ;;  %s3000_s13 = scalar_lea.vmem %s1784_s12, 1024  ;;  %p3005_p1 = scmp.lt.s32.totalorder %s1784_s12, %s1784_s12 }
 0x224   :  { %v2956_v58 = vpack.c.bf16 %v1390_v26, %v1382_v25  ;;  %v1424_v11 = vrot.slane %v1391_v48, %v1423_v52  ;;  %p3001_p0 = scmp.ne.s32.totalorder %s1784_s12, %s3000_s13  ;;  %p3006_p2 = scmp.lt.s32.totalorder %s3000_s13, %s3000_s13 }
 0x225   :  { %2919 = vmatpush1.bf16.msra.mxu0 %v2918_v28  ;;  %2943 = vmatpush1.bf16.msra.mxu1 %v2942_v41 }
 0x226   :  { %2921 = vmatprep.subr.bf16.mxu0 %v2920_v1  ;;  %2945 = vmatprep.subr.bf16.mxu1 %v2944_v42  ;;  %p3007_p3 = por %p3006_p2, %p3005_p1 }
 0x228   :  { %p3008_p4 = pnand %p3007_p3, %p3001_p0 }
 0x229   :  { %2923 = vmatpush1.bf16.msra.mxu0 %v2922_v7  ;;  %2947 = vmatpush1.bf16.msra.mxu1 %v2946_v8 }
 0x22a   :  { %2925 = vmatprep.subr.bf16.mxu0 %v2924_v9  ;;  %2949 = vmatprep.subr.bf16.mxu1 %v2948_v10  ;;  %v1412_v10 = vrot.slane %v1391_v48, %v1411_v5 }
 0x22d   :  { %2927 = vmatpush1.bf16.msra.mxu0 %v2926_v16  ;;  %2951 = vmatpush1.bf16.msra.mxu1 %v2950_v15 }
 0x22e   :  { %2929 = vmatprep.subr.bf16.mxu0 %v2928_v19  ;;  %2953 = vmatprep.subr.bf16.mxu1 %v2952_v20 }
 0x231   :  { %2931 = vmatpush1.bf16.msra.mxu0 %v2930_v31  ;;  %2955 = vmatpush1.bf16.msra.mxu1 %v2954_v32 }
 0x232   :  { %2933 = vmatprep.subr.bf16.mxu0 %v2932_v36  ;;  %2957 = vmatprep.subr.bf16.mxu1 %v2956_v58 }
 0x235   :  { %2935 = vmatpush1.bf16.msra.mxu0 %v2934_v39  ;;  %2959 = vmatpush1.bf16.msra.mxu1 %v2958_v44 }
 0x238   :  { %2050 = vmatmul.mubr.msk.f32.vlgmr.msra.gmra.mrb[14].mxu0 %vm1433_vm2, %v4527_v61  ;;  %2051 = vmatmul.mubr.msk.f32.vlgmr.msra.gmra.mrb[14].mxu1 %vm1433_vm2, %v4527_v61 }
 0x2f3   :  { %v1503_v57 = vpop.f32.mrb[12].mxu0  ;;  %v1574_v59 = vpop.f32.mrb[12].mxu1 }
 0x2f4   :  { %v1504_v60 = vadd.f32 %v1503_v57, %v1396_v51  ;;  %v1575_v27 = vadd.f32 %v1574_v59, %v1404_v53  ;;  %v1505_v62 = vpop.f32.mrb[13].mxu0  ;;  %v1576_v61 = vpop.f32.mrb[13].mxu1 }
 0x2f5   :  { %v1506_v40 = vadd.f32 %v1505_v62, %v1400_v54  ;;  %v1577_v28 = vadd.f32 %v1576_v61, %v1408_v56 }
 0x2f6   :  { %v2052_v41 = vmul.f32 -1.442695, %v1504_v60  ;;  %v2054_v50 = vmul.f32 -1.442695, %v1575_v27 }
 0x2f7   :  { %v2053_v0 = vmul.f32 -1.442695, %v1506_v40  ;;  %v2055_v1 = vmul.f32 -1.442695, %v1577_v28 }
 0x2f8   :  { %2964 = vpow2.f32 %v2052_v41 }
 0x2f9   :  { %2966 = vpow2.f32 %v2054_v50 }
 0x2fa   :  { %2968 = vpow2.f32 %v2053_v0 }
 0x2fb   :  { %2970 = vpow2.f32 %v2055_v1 }
 0x302   :  { %v2965_v42 = vpop.eup %2964 }
 0x303   :  { %v2967_v2 = vpop.eup %2966  ;;  %v1745_v3 = vadd.f32 1.0, %v2965_v42 }
 0x304   :  { %v2969_v43 = vpop.eup %2968  ;;  %v1747_v4 = vadd.f32 1.0, %v2967_v2 }
 0x305   :  { %v2971_v7 = vpop.eup %2970  ;;  %2972 = vrcp.f32 %v1745_v3  ;;  %v1746_v8 = vadd.f32 1.0, %v2969_v43 }
 0x306   :  { %2974 = vrcp.f32 %v1747_v4  ;;  %v1748_v9 = vadd.f32 1.0, %v2971_v7 }
 0x307   :  { %2976 = vrcp.f32 %v1746_v8 }
 0x308   :  { %2978 = vrcp.f32 %v1748_v9 }
 0x30b   :  { %v1645_v12 = vpop.f32.mrb[14].mxu0  ;;  %v1716_v13 = vpop.f32.mrb[14].mxu1 }
 0x30c   :  { %v1646_v14 = vadd.f32 %v1645_v12, %v1412_v10  ;;  %v1717_v16 = vadd.f32 %v1716_v13, %v1420_v35  ;;  %v1647_v15 = vpop.f32.mrb[15].mxu0  ;;  %v1718_v18 = vpop.f32.mrb[15].mxu1 }
 0x30d   :  { %v1648_v17 = vadd.f32 %v1647_v15, %v1416_v55  ;;  %v1719_v19 = vadd.f32 %v1718_v18, %v1424_v11 }
 0x30e   :  { %v2056_v20 = vmul.f32 -1.442695, %v1646_v14  ;;  %v2058_v21 = vmul.f32 -1.442695, %v1717_v16 }
 0x30f   :  { %v2973_v22 = vpop.eup %2972  ;;  %v2057_v23 = vmul.f32 -1.442695, %v1648_v17  ;;  %v2059_v24 = vmul.f32 -1.442695, %v1719_v19 }
 0x310   :  { %v2975_v25 = vpop.eup %2974  ;;  %1769 = vst [vmem:[#allocation2] sm:$0xff] %v2973_v22  ;;  %2980 = vpow2.f32 %v2056_v20 }
 0x311   :  { %v2977_v26 = vpop.eup %2976  ;;  %1771 = vst [vmem:[#allocation2 + $0x10] sm:$0xff] %v2975_v25  ;;  %2982 = vpow2.f32 %v2058_v21 }
 0x312   :  { %v2979_v31 = vpop.eup %2978  ;;  %1770 = vst [vmem:[#allocation2 + $0x8] sm:$0xff] %v2977_v26  ;;  %2984 = vpow2.f32 %v2057_v23 }
 0x313   :  { %1772 = vst [vmem:[#allocation2 + $0x18] sm:$0xff] %v2979_v31  ;;  %2986 = vpow2.f32 %v2059_v24 }
 0x31a   :  { %v2981_v32 = vpop.eup %2980 }
 0x31b   :  { %v2983_v33 = vpop.eup %2982  ;;  %v1749_v36 = vadd.f32 1.0, %v2981_v32 }
 0x31c   :  { %v2985_v58 = vpop.eup %2984  ;;  %v1751_v37 = vadd.f32 1.0, %v2983_v33 }
 0x31d   :  { %v2987_v38 = vpop.eup %2986  ;;  %2988 = vrcp.f32 %v1749_v36  ;;  %v1750_v63 = vadd.f32 1.0, %v2985_v58 }
 0x31e   :  { %2990 = vrcp.f32 %v1751_v37  ;;  %v1752_v39 = vadd.f32 1.0, %v2987_v38 }
 0x31f   :  { %2992 = vrcp.f32 %v1750_v63 }
 0x320   :  { %2994 = vrcp.f32 %v1752_v39 }
 0x327   :  { %v2989_v44 = vpop.eup %2988 }
 0x328   :  { %v2991_v46 = vpop.eup %2990  ;;  %1773 = vst [vmem:[#allocation2 + $0x20] sm:$0xff] %v2989_v44 }
 0x329   :  { %v2993_v45 = vpop.eup %2992  ;;  %1775 = vst [vmem:[#allocation2 + $0x30] sm:$0xff] %v2991_v46 }
 0x32a   :  { %v2995_v47 = vpop.eup %2994  ;;  %1774 = vst [vmem:[#allocation2 + $0x28] sm:$0xff] %v2993_v45 }
 0x32b   :  { %1776 = vst [vmem:[#allocation2 + $0x38] sm:$0xff] %v2995_v47 }
 0x32c   :  { %3011 = shalt.err (!%p3008_p4)
}
 0x32d   :  { %s3012_s16 = scalar_lea.hbm %s4650_s5, 1024 }
 0x32e   :  { %p3013_p5 = scmp.ne.s32.totalorder %s4650_s5, %s3012_s16  ;;  %p3016_p6 = scmp.lt.u32.totalorder %s3012_s16, %s4650_s5 }
 0x330   :  { %p3018_p7 = pnand %p3016_p6, %p3013_p5 }
 0x332   :  { %3021 = shalt.err (!%p3018_p7)
}
 0x333   :  { %1786 = dma.vmem_to_hbm [thread:$0]  %s1784_s12, 1024, %s4650_s5, [#allocation3]  }
 0x334   :  { %3022 = dma.done.wait [#allocation3], 1024  }
 0x335   :  { %3023 = vsyncadd [#allocation3], 4294966272 }
 0x336   :  { %1790 = vsyncpa [#allocation3], 1 }

</bundles_post_ra>
